<compile_context>
chip_gen: v5e
topology: v5e:2x2
jax: 0.10.0
libtpu: 0.0.40
codegen_flags: <defaults>
</compile_context>

<pallas_src>
import functools
import math

import jax
import jax.numpy as jnp
from jax import lax
from jax.experimental import pallas as pl
from jax.experimental.pallas import tpu as pltpu


# MXU input dtype (accumulation is always f32 via preferred_element_type).
MATMUL_DTYPE = jnp.bfloat16

# Safe scoped-VMEM budget on every generation (v7x has 64 MiB physical;
# defaults are only 16 MiB on v5e / 32 MiB on v6e+).
VMEM_LIMIT_BYTES = 48 * 1024 * 1024


# ----------------------------- helpers --------------------------------------

def _pick_tile(n, target, multiple=16):
    """Largest divisor of n that is <= target and a multiple of `multiple`,
    falling back to the full dimension (always a legal block)."""
    if n <= target:
        return n
    t = (target // multiple) * multiple
    while t >= multiple:
        if n % t == 0:
            return t
        t -= multiple
    return n


def _layernorm_f32(x, g, b, eps):
    # torch .std() is unbiased (ddof=1); eps is added to std, not variance.
    d = x.shape[-1]
    mean = jnp.mean(x, axis=-1, keepdims=True)
    var = jnp.sum((x - mean) ** 2, axis=-1, keepdims=True) / (d - 1)
    return g * (x - mean) / (jnp.sqrt(var) + eps) + b


# ----------------------------- Pallas kernels -------------------------------

def layernorm_kernel(x_ref, g_ref, b_ref, o_ref, *, eps):
    x = x_ref[...].astype(jnp.float32)
    o_ref[...] = _layernorm_f32(x, g_ref[...], b_ref[...], eps).astype(o_ref.dtype)


def ln_qkv_kernel(x_ref, g_ref, b_ref, wqkv_ref, bqkv_ref,
                  q_ref, k_ref, v_ref, *, eps):
    """Fused LayerNorm + packed QKV projection for one M tile."""
    x = x_ref[...].astype(jnp.float32)                      # [tm, D]
    d = x.shape[-1]
    n = _layernorm_f32(x, g_ref[...], b_ref[...], eps)
    qkv = (jnp.dot(n.astype(wqkv_ref.dtype), wqkv_ref[...],
                   preferred_element_type=jnp.float32)
           + bqkv_ref[...])                                 # [tm, 3D] f32
    q_ref[...] = qkv[:, 0 * d:1 * d].astype(q_ref.dtype)
    k_ref[...] = qkv[:, 1 * d:2 * d].astype(k_ref.dtype)
    v_ref[...] = qkv[:, 2 * d:3 * d].astype(v_ref.dtype)


def attn_ffn_kernel(q_ref, k_ref, v_ref, m_ref, x_ref,
                    wo_ref, bo_ref, g_ref, bln_ref,
                    w1_ref, b1_ref, w2_ref, b2_ref,
                    o_ref, *, n_heads, scale, eps):
    """Fused: multi-head attention + W_o + residual, then LN + FFN + residual.

    One grid step handles one (batch, query-tile) pair and ALL heads, so both
    residual adds and the FFN operate on the full lane-dense D dimension and
    the attention output never leaves VMEM before the FFN.
    """
    d = q_ref.shape[-1]
    dk = d // n_heads

    # Hoisted mask bias (additive -1e9 at masked positions), computed once.
    m = m_ref[0]                                            # [1, S] (1 = keep)
    mask_bias = jnp.where(m == 0.0, jnp.float32(-1e9), jnp.float32(0.0))

    # Fold 1/sqrt(dk) into the Q tile once (f32 scale, single bf16 cast).
    q_all = (q_ref[0].astype(jnp.float32) * scale).astype(k_ref.dtype)  # [tq, D]

    heads = []
    for hh in range(n_heads):                               # static unrolled loop
        lo, hi = hh * dk, (hh + 1) * dk
        qh = q_all[:, lo:hi]                                # [tq, dk] bf16
        kh = k_ref[0, :, lo:hi]                             # [S,  dk] bf16
        vh = v_ref[0, :, lo:hi]                             # [S,  dk] bf16
        # QK^T without materializing K.T: contract the last dim of both.
        s = lax.dot_general(qh, kh, (((1,), (1,)), ((), ())),
                            preferred_element_type=jnp.float32)          # [tq, S]
        s = s + mask_bias
        s = s - jnp.max(s, axis=-1, keepdims=True)
        e = jnp.exp(s)
        p = e * pl.reciprocal(jnp.sum(e, axis=-1, keepdims=True), approx=True)
        heads.append(jnp.dot(p.astype(vh.dtype), vh,
                             preferred_element_type=jnp.float32))         # [tq, dk]
    attn = jnp.concatenate(heads, axis=-1)                  # [tq, D] f32 (registers)

    # Output projection + residual 1.
    proj = (jnp.dot(attn.astype(wo_ref.dtype), wo_ref[...],
                    preferred_element_type=jnp.float32)
            + bo_ref[...])
    y = x_ref[0].astype(jnp.float32) + proj                 # [tq, D] f32

    # Sublayer 2: LN -> FFN -> residual, fused in the same grid step.
    nrm = _layernorm_f32(y, g_ref[...], bln_ref[...], eps)
    hidden = (jnp.dot(nrm.astype(w1_ref.dtype), w1_ref[...],
                      preferred_element_type=jnp.float32)
              + b1_ref[...])
    hidden = jnp.maximum(hidden, 0.0)                       # ReLU
    out = (jnp.dot(hidden.astype(w2_ref.dtype), w2_ref[...],
                   preferred_element_type=jnp.float32)
           + b2_ref[...])
    o_ref[0] = (y + out).astype(o_ref.dtype)


# ----------------------------- Pallas wrappers ------------------------------

def layernorm(x2d, gamma, beta, *, tm, eps=1e-6):
    M, D = x2d.shape
    return pl.pallas_call(
        functools.partial(layernorm_kernel, eps=eps),
        out_shape=jax.ShapeDtypeStruct((M, D), x2d.dtype),
        grid=(M // tm,),
        in_specs=[pl.BlockSpec((tm, D), lambda i: (i, 0)),
                  pl.BlockSpec((1, D), lambda i: (0, 0)),
                  pl.BlockSpec((1, D), lambda i: (0, 0))],
        out_specs=pl.BlockSpec((tm, D), lambda i: (i, 0)),
        compiler_params=pltpu.CompilerParams(
            dimension_semantics=("parallel",),
            vmem_limit_bytes=VMEM_LIMIT_BYTES),
    )(x2d, gamma.reshape(1, D), beta.reshape(1, D))


def ln_qkv(x2d, gamma, beta, wqkv, bqkv, *, tm, eps=1e-6):
    M, D = x2d.shape
    D3 = wqkv.shape[1]
    itm = jnp.dtype(MATMUL_DTYPE).itemsize
    cost = pl.CostEstimate(
        flops=2 * M * D * D3,
        transcendentals=0,
        bytes_accessed=(M * D * x2d.dtype.itemsize
                        + D * D3 * wqkv.dtype.itemsize
                        + 3 * M * D * itm))
    out_sd = jax.ShapeDtypeStruct((M, D), MATMUL_DTYPE)
    return pl.pallas_call(
        functools.partial(ln_qkv_kernel, eps=eps),
        out_shape=(out_sd, out_sd, out_sd),
        grid=(M // tm,),
        in_specs=[
            pl.BlockSpec((tm, D), lambda i: (i, 0)),
            pl.BlockSpec((1, D), lambda i: (0, 0)),
            pl.BlockSpec((1, D), lambda i: (0, 0)),
            pl.BlockSpec((D, D3), lambda i: (0, 0)),     # weights VMEM-resident
            pl.BlockSpec((1, D3), lambda i: (0, 0)),
        ],
        out_specs=(
            pl.BlockSpec((tm, D), lambda i: (i, 0)),
            pl.BlockSpec((tm, D), lambda i: (i, 0)),
            pl.BlockSpec((tm, D), lambda i: (i, 0)),
        ),
        compiler_params=pltpu.CompilerParams(
            dimension_semantics=("parallel",),
            vmem_limit_bytes=VMEM_LIMIT_BYTES),
        cost_estimate=cost,
    )(x2d, gamma.reshape(1, D), beta.reshape(1, D), wqkv, bqkv.reshape(1, D3))


def attn_ffn_block(q, k, v, mask, x_res, p, *, n_heads, tq, eps=1e-6):
    """Attention + W_o + residual + LN + FFN + residual, one pallas_call."""
    B, S, D = q.shape
    F = p["w1"].shape[1]
    dk = D // n_heads
    scale = 1.0 / math.sqrt(dk)
    cost = pl.CostEstimate(
        flops=4 * B * S * S * D + 2 * B * S * D * D + 4 * B * S * D * F,
        transcendentals=B * S * S,
        bytes_accessed=(3 * B * S * D * q.dtype.itemsize          # Q,K,V
                        + 2 * B * S * D * x_res.dtype.itemsize    # x in, out
                        + (D * D + 2 * D * F) * p["wo"].dtype.itemsize
                        + B * S * mask.dtype.itemsize))
    return pl.pallas_call(
        functools.partial(attn_ffn_kernel, n_heads=n_heads, scale=scale, eps=eps),
        out_shape=jax.ShapeDtypeStruct((B, S, D), x_res.dtype),
        grid=(B, S // tq),
        in_specs=[
            pl.BlockSpec((1, tq, D), lambda b, i: (b, i, 0)),   # Q tile
            pl.BlockSpec((1, S, D), lambda b, i: (b, 0, 0)),    # full K (per batch)
            pl.BlockSpec((1, S, D), lambda b, i: (b, 0, 0)),    # full V (per batch)
            pl.BlockSpec((1, 1, S), lambda b, i: (b, 0, 0)),    # mask [B,1,S]
            pl.BlockSpec((1, tq, D), lambda b, i: (b, i, 0)),   # residual x
            pl.BlockSpec((D, D), lambda b, i: (0, 0)),          # W_o  (resident)
            pl.BlockSpec((1, D), lambda b, i: (0, 0)),
            pl.BlockSpec((1, D), lambda b, i: (0, 0)),          # ln2 gamma
            pl.BlockSpec((1, D), lambda b, i: (0, 0)),          # ln2 beta
            pl.BlockSpec((D, F), lambda b, i: (0, 0)),          # W1   (resident)
            pl.BlockSpec((1, F), lambda b, i: (0, 0)),
            pl.BlockSpec((F, D), lambda b, i: (0, 0)),          # W2   (resident)
            pl.BlockSpec((1, D), lambda b, i: (0, 0)),
        ],
        out_specs=pl.BlockSpec((1, tq, D), lambda b, i: (b, i, 0)),
        compiler_params=pltpu.CompilerParams(
            dimension_semantics=("parallel", "parallel"),
            vmem_limit_bytes=VMEM_LIMIT_BYTES),
        cost_estimate=cost,
    )(q, k, v, mask, x_res,
      p["wo"], p["bo"].reshape(1, D),
      p["ln2_g"].reshape(1, D), p["ln2_b"].reshape(1, D),
      p["w1"], p["b1"].reshape(1, F), p["w2"], p["b2"].reshape(1, D))


# ----------------------------- Encoder forward ------------------------------

def encoder_layer_fwd(x, mask, p, *, h, tm, tq):
    B, S, D = x.shape
    x2 = x.reshape(B * S, D)

    # --- sublayer 0 inputs: LN + packed QKV projection (tiled over M) ---
    q, k, v = ln_qkv(x2, p["ln1_g"], p["ln1_b"], p["wqkv"], p["bqkv"], tm=tm)

    # --- attention + W_o + residual + LN + FFN + residual, fused ---
    return attn_ffn_block(q.reshape(B, S, D), k.reshape(B, S, D),
                          v.reshape(B, S, D), mask, x, p, n_heads=h, tq=tq)


def encoder_fwd(x, mask, layer_params, final_gamma, final_beta, *, h):
    B, S, D = x.shape
    # Matmul-heavy kernels: 256-row tiles (matches 256x256 MXU granularity,
    # keeps double-buffered tiles + resident bf16 weights + f32 FFN hidden
    # well under the v7x 64 MiB VMEM budget; also fine on v5e/v6e).
    tm = _pick_tile(B * S, 256)
    tq = _pick_tile(S, 256)
    # Memory-bound standalone LayerNorm: bigger tile (v6e roofline: 512-1024
    # rows reach ~85% of HBM BW vs ~63% at 256).
    tm_ln = _pick_tile(B * S, 1024)
    for p in layer_params:
        x = encoder_layer_fwd(x, mask, p, h=h, tm=tm, tq=tq)
    out = layernorm(x.reshape(B * S, D), final_gamma, final_beta, tm=tm_ln)
    return out.reshape(B, S, D)


# ----------------------------- Param init -----------------------------------

def init_layer_params(key, D, d_ff):
    ks = jax.random.split(key, 10)
    s = 0.1
    wq = jax.random.normal(ks[0], (D, D), jnp.float32) * s
    bq = jax.random.normal(ks[1], (D,), jnp.float32) * 0.01
    wk = jax.random.normal(ks[2], (D, D), jnp.float32) * s
    bk = jax.random.normal(ks[3], (D,), jnp.float32) * 0.01
    wv = jax.random.normal(ks[4], (D, D), jnp.float32) * s
    bv = jax.random.normal(ks[5], (D,), jnp.float32) * 0.01
    wo = jax.random.normal(ks[6], (D, D), jnp.float32) * s
    bo = jax.random.normal(ks[7], (D,), jnp.float32) * 0.01
    w1 = jax.random.normal(ks[8], (D, d_ff), jnp.float32) * s
    w2 = jax.random.normal(ks[9], (d_ff, D), jnp.float32) * s
    return dict(
        # pre-packed [D, 3D] QKV weight (bf16 for the MXU), f32 bias
        wqkv=jnp.concatenate([wq, wk, wv], axis=1).astype(MATMUL_DTYPE),
        bqkv=jnp.concatenate([bq, bk, bv], axis=0),
        wo=wo.astype(MATMUL_DTYPE), bo=bo,
        w1=w1.astype(MATMUL_DTYPE), b1=jnp.zeros((d_ff,), jnp.float32),
        w2=w2.astype(MATMUL_DTYPE), b2=jnp.zeros((D,), jnp.float32),
        # LayerNorm init: gamma = ones, beta = zeros (as in the module)
        ln1_g=jnp.ones((D,), jnp.float32), ln1_b=jnp.zeros((D,), jnp.float32),
        ln2_g=jnp.ones((D,), jnp.float32), ln2_b=jnp.zeros((D,), jnp.float32),
    )


# ----------------------------- Main ------------------------------------------

if __name__ == "__main__":
    B, S, D, h, d_ff, N = 2, 8, 32, 4, 64, 2

    key = jax.random.PRNGKey(0)
    kx, *kl = jax.random.split(key, N + 1)

    x = jax.random.normal(kx, (B, S, D), jnp.float32)
    # source mask [B, 1, S]: mask out the last two positions of batch element 1
    mask = jnp.ones((B, 1, S), jnp.float32).at[1, 0, S - 2:].set(0.0)

    layer_params = [init_layer_params(kl[i], D, d_ff) for i in range(N)]
    final_gamma = jnp.ones((D,), jnp.float32)
    final_beta = jnp.zeros((D,), jnp.float32)

    fwd = jax.jit(functools.partial(encoder_fwd, h=h))
    out = fwd(x, mask, layer_params, final_gamma, final_beta)
    out = jax.block_until_ready(out)
    assert out.shape == (B, S, D)
    assert bool(jnp.all(jnp.isfinite(out)))
    print("KERNEL_OK")
</pallas_src>

<mosaic_0001>
module attributes {stable_mosaic.version = 11 : i64} {
  func.func @ln_qkv_kernel(%arg0: i32, %arg1: memref<16x32xf32, #tpu.memory_space<vmem>>, %arg2: memref<1x32xf32, #tpu.memory_space<vmem>>, %arg3: memref<1x32xf32, #tpu.memory_space<vmem>>, %arg4: memref<32x96xbf16, #tpu.memory_space<vmem>>, %arg5: memref<1x96xf32, #tpu.memory_space<vmem>>, %arg6: memref<16x32xbf16, #tpu.memory_space<vmem>>, %arg7: memref<16x32xbf16, #tpu.memory_space<vmem>>, %arg8: memref<16x32xbf16, #tpu.memory_space<vmem>>) attributes {dimension_semantics = [#tpu.dimension_semantics<parallel>], iteration_bounds = array<i64: 1>, scalar_prefetch = 0 : i64, scratch_operands = 0 : i64, tpu.core_type = #tpu.core_type<tc>, window_params = [{transform_indices = @transform_0, window_bounds = array<i64: 16, 32>}, {pipeline_mode = #tpu.pipeline_mode<synchronous>, transform_indices = @transform_1, window_bounds = array<i64: 1, 32>}, {pipeline_mode = #tpu.pipeline_mode<synchronous>, transform_indices = @transform_2, window_bounds = array<i64: 1, 32>}, {pipeline_mode = #tpu.pipeline_mode<synchronous>, transform_indices = @transform_3, window_bounds = array<i64: 32, 96>}, {pipeline_mode = #tpu.pipeline_mode<synchronous>, transform_indices = @transform_4, window_bounds = array<i64: 1, 96>}, {transform_indices = @transform_5, window_bounds = array<i64: 16, 32>}, {transform_indices = @transform_6, window_bounds = array<i64: 16, 32>}, {transform_indices = @transform_7, window_bounds = array<i64: 16, 32>}]} {
    %c0 = arith.constant 0 : index
    %c0_0 = arith.constant 0 : index
    %0 = vector.load %arg1[%c0, %c0_0] : memref<16x32xf32, #tpu.memory_space<vmem>>, vector<16x32xf32>
    %c0_1 = arith.constant 0 : index
    %c0_2 = arith.constant 0 : index
    %1 = vector.load %arg2[%c0_1, %c0_2] : memref<1x32xf32, #tpu.memory_space<vmem>>, vector<1x32xf32>
    %c0_3 = arith.constant 0 : index
    %c0_4 = arith.constant 0 : index
    %2 = vector.load %arg3[%c0_3, %c0_4] : memref<1x32xf32, #tpu.memory_space<vmem>>, vector<1x32xf32>
    %cst = arith.constant dense<0.000000e+00> : vector<16xf32>
    %3 = vector.multi_reduction <add>, %0, %cst [1] : vector<16x32xf32> to vector<16xf32>
    %4 = vector.shape_cast %3 : vector<16xf32> to vector<16x1xf32>
    %cst_5 = arith.constant 3.200000e+01 : f32
    %5 = vector.broadcast %cst_5 : f32 to vector<16x1xf32>
    %6 = arith.divf %4, %5 : vector<16x1xf32>
    %7 = vector.broadcast %6 : vector<16x1xf32> to vector<16x32xf32>
    %8 = arith.subf %0, %7 : vector<16x32xf32>
    %9 = arith.mulf %8, %8 : vector<16x32xf32>
    %cst_6 = arith.constant dense<0.000000e+00> : vector<16xf32>
    %10 = vector.multi_reduction <add>, %9, %cst_6 [1] : vector<16x32xf32> to vector<16xf32>
    %11 = vector.shape_cast %10 : vector<16xf32> to vector<16x1xf32>
    %cst_7 = arith.constant 3.100000e+01 : f32
    %12 = vector.broadcast %cst_7 : f32 to vector<16x1xf32>
    %13 = arith.divf %11, %12 : vector<16x1xf32>
    %14 = vector.broadcast %6 : vector<16x1xf32> to vector<16x32xf32>
    %15 = arith.subf %0, %14 : vector<16x32xf32>
    %16 = vector.broadcast %1 : vector<1x32xf32> to vector<16x32xf32>
    %17 = arith.mulf %16, %15 : vector<16x32xf32>
    %18 = math.sqrt %13 : vector<16x1xf32>
    %cst_8 = arith.constant 9.99999997E-7 : f32
    %19 = vector.broadcast %cst_8 : f32 to vector<16x1xf32>
    %20 = arith.addf %18, %19 : vector<16x1xf32>
    %21 = vector.broadcast %20 : vector<16x1xf32> to vector<16x32xf32>
    %22 = arith.divf %17, %21 : vector<16x32xf32>
    %23 = vector.broadcast %2 : vector<1x32xf32> to vector<16x32xf32>
    %24 = arith.addf %22, %23 : vector<16x32xf32>
    %25 = arith.truncf %24 : vector<16x32xf32> to vector<16x32xbf16>
    %c0_9 = arith.constant 0 : index
    %c0_10 = arith.constant 0 : index
    %26 = vector.load %arg4[%c0_9, %c0_10] : memref<32x96xbf16, #tpu.memory_space<vmem>>, vector<32x96xbf16>
    %cst_11 = arith.constant dense<0.000000e+00> : vector<16x96xf32>
    %27 = tpu.matmul %25, %26, %cst_11 {dimension_numbers = #tpu.dot_dimension_numbers<[1], [0], [0], [1], [0, 0, 1, 1], [], []>} : vector<16x32xbf16>, vector<32x96xbf16>, vector<16x96xf32> -> vector<16x96xf32>
    %c0_12 = arith.constant 0 : index
    %c0_13 = arith.constant 0 : index
    %28 = vector.load %arg5[%c0_12, %c0_13] : memref<1x96xf32, #tpu.memory_space<vmem>>, vector<1x96xf32>
    %29 = vector.broadcast %28 : vector<1x96xf32> to vector<16x96xf32>
    %30 = arith.addf %27, %29 : vector<16x96xf32>
    %31 = vector.extract_strided_slice %30 {offsets = [0, 0], sizes = [16, 32], strides = [1, 1]} : vector<16x96xf32> to vector<16x32xf32>
    %32 = arith.truncf %31 : vector<16x32xf32> to vector<16x32xbf16>
    %c0_14 = arith.constant 0 : index
    %c0_15 = arith.constant 0 : index
    %33 = vector.load %arg6[%c0_14, %c0_15] : memref<16x32xbf16, #tpu.memory_space<vmem>>, vector<16x32xbf16>
    tpu.vector_store %arg6[%c0_14, %c0_15], %32 {strides = array<i32>} : memref<16x32xbf16, #tpu.memory_space<vmem>>, vector<16x32xbf16>,
    %34 = vector.extract_strided_slice %30 {offsets = [0, 32], sizes = [16, 32], strides = [1, 1]} : vector<16x96xf32> to vector<16x32xf32>
    %35 = arith.truncf %34 : vector<16x32xf32> to vector<16x32xbf16>
    %c0_16 = arith.constant 0 : index
    %c0_17 = arith.constant 0 : index
    %36 = vector.load %arg7[%c0_16, %c0_17] : memref<16x32xbf16, #tpu.memory_space<vmem>>, vector<16x32xbf16>
    tpu.vector_store %arg7[%c0_16, %c0_17], %35 {strides = array<i32>} : memref<16x32xbf16, #tpu.memory_space<vmem>>, vector<16x32xbf16>,
    %37 = vector.extract_strided_slice %30 {offsets = [0, 64], sizes = [16, 32], strides = [1, 1]} : vector<16x96xf32> to vector<16x32xf32>
    %38 = arith.truncf %37 : vector<16x32xf32> to vector<16x32xbf16>
    %c0_18 = arith.constant 0 : index
    %c0_19 = arith.constant 0 : index
    %39 = vector.load %arg8[%c0_18, %c0_19] : memref<16x32xbf16, #tpu.memory_space<vmem>>, vector<16x32xbf16>
    tpu.vector_store %arg8[%c0_18, %c0_19], %38 {strides = array<i32>} : memref<16x32xbf16, #tpu.memory_space<vmem>>, vector<16x32xbf16>,
    return
  }
  func.func @transform_0(%arg0: i32) -> (i32, i32) {
    %c0_i32 = arith.constant 0 : i32
    %c0_i32_0 = arith.constant 0 : i32
    return %arg0, %c0_i32 : i32, i32
  }
  func.func @transform_1(%arg0: i32) -> (i32, i32) {
    %c0_i32 = arith.constant 0 : i32
    %c0_i32_0 = arith.constant 0 : i32
    %c0_i32_1 = arith.constant 0 : i32
    return %c0_i32, %c0_i32_0 : i32, i32
  }
  func.func @transform_2(%arg0: i32) -> (i32, i32) {
    %c0_i32 = arith.constant 0 : i32
    %c0_i32_0 = arith.constant 0 : i32
    %c0_i32_1 = arith.constant 0 : i32
    return %c0_i32, %c0_i32_0 : i32, i32
  }
  func.func @transform_3(%arg0: i32) -> (i32, i32) {
    %c0_i32 = arith.constant 0 : i32
    %c0_i32_0 = arith.constant 0 : i32
    %c0_i32_1 = arith.constant 0 : i32
    return %c0_i32, %c0_i32_0 : i32, i32
  }
  func.func @transform_4(%arg0: i32) -> (i32, i32) {
    %c0_i32 = arith.constant 0 : i32
    %c0_i32_0 = arith.constant 0 : i32
    %c0_i32_1 = arith.constant 0 : i32
    return %c0_i32, %c0_i32_0 : i32, i32
  }
  func.func @transform_5(%arg0: i32) -> (i32, i32) {
    %c0_i32 = arith.constant 0 : i32
    %c0_i32_0 = arith.constant 0 : i32
    return %arg0, %c0_i32 : i32, i32
  }
  func.func @transform_6(%arg0: i32) -> (i32, i32) {
    %c0_i32 = arith.constant 0 : i32
    %c0_i32_0 = arith.constant 0 : i32
    return %arg0, %c0_i32 : i32, i32
  }
  func.func @transform_7(%arg0: i32) -> (i32, i32) {
    %c0_i32 = arith.constant 0 : i32
    %c0_i32_0 = arith.constant 0 : i32
    return %arg0, %c0_i32 : i32, i32
  }
}

module attributes {stable_mosaic.version = 11 : i64} {
  func.func @ln_qkv_kernel(%arg0: i32, %arg1: memref<16x32xf32, #tpu.memory_space<vmem>>, %arg2: memref<1x32xf32, #tpu.memory_space<vmem>>, %arg3: memref<1x32xf32, #tpu.memory_space<vmem>>, %arg4: memref<32x96xbf16, #tpu.memory_space<vmem>>, %arg5: memref<1x96xf32, #tpu.memory_space<vmem>>, %arg6: memref<16x32xbf16, #tpu.memory_space<vmem>>, %arg7: memref<16x32xbf16, #tpu.memory_space<vmem>>, %arg8: memref<16x32xbf16, #tpu.memory_space<vmem>>) attributes {dimension_semantics = [#tpu.dimension_semantics<parallel>], iteration_bounds = array<i64: 1>, scalar_prefetch = 0 : i64, scratch_operands = 0 : i64, tpu.core_type = #tpu.core_type<tc>, window_params = [{transform_indices = @transform_0, window_bounds = array<i64: 16, 32>}, {pipeline_mode = #tpu.pipeline_mode<synchronous>, transform_indices = @transform_1, window_bounds = array<i64: 1, 32>}, {pipeline_mode = #tpu.pipeline_mode<synchronous>, transform_indices = @transform_2, window_bounds = array<i64: 1, 32>}, {pipeline_mode = #tpu.pipeline_mode<synchronous>, transform_indices = @transform_3, window_bounds = array<i64: 32, 96>}, {pipeline_mode = #tpu.pipeline_mode<synchronous>, transform_indices = @transform_4, window_bounds = array<i64: 1, 96>}, {transform_indices = @transform_5, window_bounds = array<i64: 16, 32>}, {transform_indices = @transform_6, window_bounds = array<i64: 16, 32>}, {transform_indices = @transform_7, window_bounds = array<i64: 16, 32>}]} {
    %c0 = arith.constant 0 : index
    %c0_0 = arith.constant 0 : index
    %0 = vector.load %arg1[%c0, %c0_0] : memref<16x32xf32, #tpu.memory_space<vmem>>, vector<16x32xf32>
    %c0_1 = arith.constant 0 : index
    %c0_2 = arith.constant 0 : index
    %1 = vector.load %arg2[%c0_1, %c0_2] : memref<1x32xf32, #tpu.memory_space<vmem>>, vector<1x32xf32>
    %c0_3 = arith.constant 0 : index
    %c0_4 = arith.constant 0 : index
    %2 = vector.load %arg3[%c0_3, %c0_4] : memref<1x32xf32, #tpu.memory_space<vmem>>, vector<1x32xf32>
    %cst = arith.constant dense<0.000000e+00> : vector<16xf32>
    %3 = vector.multi_reduction <add>, %0, %cst [1] : vector<16x32xf32> to vector<16xf32>
    %4 = vector.shape_cast %3 : vector<16xf32> to vector<16x1xf32>
    %cst_5 = arith.constant 3.200000e+01 : f32
    %5 = vector.broadcast %cst_5 : f32 to vector<16x1xf32>
    %6 = arith.divf %4, %5 : vector<16x1xf32>
    %7 = vector.broadcast %6 : vector<16x1xf32> to vector<16x32xf32>
    %8 = arith.subf %0, %7 : vector<16x32xf32>
    %9 = arith.mulf %8, %8 : vector<16x32xf32>
    %cst_6 = arith.constant dense<0.000000e+00> : vector<16xf32>
    %10 = vector.multi_reduction <add>, %9, %cst_6 [1] : vector<16x32xf32> to vector<16xf32>
    %11 = vector.shape_cast %10 : vector<16xf32> to vector<16x1xf32>
    %cst_7 = arith.constant 3.100000e+01 : f32
    %12 = vector.broadcast %cst_7 : f32 to vector<16x1xf32>
    %13 = arith.divf %11, %12 : vector<16x1xf32>
    %14 = vector.broadcast %6 : vector<16x1xf32> to vector<16x32xf32>
    %15 = arith.subf %0, %14 : vector<16x32xf32>
    %16 = vector.broadcast %1 : vector<1x32xf32> to vector<16x32xf32>
    %17 = arith.mulf %16, %15 : vector<16x32xf32>
    %18 = math.sqrt %13 : vector<16x1xf32>
    %cst_8 = arith.constant 9.99999997E-7 : f32
    %19 = vector.broadcast %cst_8 : f32 to vector<16x1xf32>
    %20 = arith.addf %18, %19 : vector<16x1xf32>
    %21 = vector.broadcast %20 : vector<16x1xf32> to vector<16x32xf32>
    %22 = arith.divf %17, %21 : vector<16x32xf32>
    %23 = vector.broadcast %2 : vector<1x32xf32> to vector<16x32xf32>
    %24 = arith.addf %22, %23 : vector<16x32xf32>
    %25 = arith.truncf %24 : vector<16x32xf32> to vector<16x32xbf16>
    %c0_9 = arith.constant 0 : index
    %c0_10 = arith.constant 0 : index
    %26 = vector.load %arg4[%c0_9, %c0_10] : memref<32x96xbf16, #tpu.memory_space<vmem>>, vector<32x96xbf16>
    %cst_11 = arith.constant dense<0.000000e+00> : vector<16x96xf32>
    %27 = tpu.matmul %25, %26, %cst_11 {dimension_numbers = #tpu.dot_dimension_numbers<[1], [0], [0], [1], [0, 0, 1, 1], [], []>} : vector<16x32xbf16>, vector<32x96xbf16>, vector<16x96xf32> -> vector<16x96xf32>
    %c0_12 = arith.constant 0 : index
    %c0_13 = arith.constant 0 : index
    %28 = vector.load %arg5[%c0_12, %c0_13] : memref<1x96xf32, #tpu.memory_space<vmem>>, vector<1x96xf32>
    %29 = vector.broadcast %28 : vector<1x96xf32> to vector<16x96xf32>
    %30 = arith.addf %27, %29 : vector<16x96xf32>
    %31 = vector.extract_strided_slice %30 {offsets = [0, 0], sizes = [16, 32], strides = [1, 1]} : vector<16x96xf32> to vector<16x32xf32>
    %32 = arith.truncf %31 : vector<16x32xf32> to vector<16x32xbf16>
    %c0_14 = arith.constant 0 : index
    %c0_15 = arith.constant 0 : index
    %33 = vector.load %arg6[%c0_14, %c0_15] : memref<16x32xbf16, #tpu.memory_space<vmem>>, vector<16x32xbf16>
    tpu.vector_store %arg6[%c0_14, %c0_15], %32 {strides = array<i32>} : memref<16x32xbf16, #tpu.memory_space<vmem>>, vector<16x32xbf16>,
    %34 = vector.extract_strided_slice %30 {offsets = [0, 32], sizes = [16, 32], strides = [1, 1]} : vector<16x96xf32> to vector<16x32xf32>
    %35 = arith.truncf %34 : vector<16x32xf32> to vector<16x32xbf16>
    %c0_16 = arith.constant 0 : index
    %c0_17 = arith.constant 0 : index
    %36 = vector.load %arg7[%c0_16, %c0_17] : memref<16x32xbf16, #tpu.memory_space<vmem>>, vector<16x32xbf16>
    tpu.vector_store %arg7[%c0_16, %c0_17], %35 {strides = array<i32>} : memref<16x32xbf16, #tpu.memory_space<vmem>>, vector<16x32xbf16>,
    %37 = vector.extract_strided_slice %30 {offsets = [0, 64], sizes = [16, 32], strides = [1, 1]} : vector<16x96xf32> to vector<16x32xf32>
    %38 = arith.truncf %37 : vector<16x32xf32> to vector<16x32xbf16>
    %c0_18 = arith.constant 0 : index
    %c0_19 = arith.constant 0 : index
    %39 = vector.load %arg8[%c0_18, %c0_19] : memref<16x32xbf16, #tpu.memory_space<vmem>>, vector<16x32xbf16>
    tpu.vector_store %arg8[%c0_18, %c0_19], %38 {strides = array<i32>} : memref<16x32xbf16, #tpu.memory_space<vmem>>, vector<16x32xbf16>,
    return
  }
  func.func @transform_0(%arg0: i32) -> (i32, i32) {
    %c0_i32 = arith.constant 0 : i32
    %c0_i32_0 = arith.constant 0 : i32
    return %arg0, %c0_i32 : i32, i32
  }
  func.func @transform_1(%arg0: i32) -> (i32, i32) {
    %c0_i32 = arith.constant 0 : i32
    %c0_i32_0 = arith.constant 0 : i32
    %c0_i32_1 = arith.constant 0 : i32
    return %c0_i32, %c0_i32_0 : i32, i32
  }
  func.func @transform_2(%arg0: i32) -> (i32, i32) {
    %c0_i32 = arith.constant 0 : i32
    %c0_i32_0 = arith.constant 0 : i32
    %c0_i32_1 = arith.constant 0 : i32
    return %c0_i32, %c0_i32_0 : i32, i32
  }
  func.func @transform_3(%arg0: i32) -> (i32, i32) {
    %c0_i32 = arith.constant 0 : i32
    %c0_i32_0 = arith.constant 0 : i32
    %c0_i32_1 = arith.constant 0 : i32
    return %c0_i32, %c0_i32_0 : i32, i32
  }
  func.func @transform_4(%arg0: i32) -> (i32, i32) {
    %c0_i32 = arith.constant 0 : i32
    %c0_i32_0 = arith.constant 0 : i32
    %c0_i32_1 = arith.constant 0 : i32
    return %c0_i32, %c0_i32_0 : i32, i32
  }
  func.func @transform_5(%arg0: i32) -> (i32, i32) {
    %c0_i32 = arith.constant 0 : i32
    %c0_i32_0 = arith.constant 0 : i32
    return %arg0, %c0_i32 : i32, i32
  }
  func.func @transform_6(%arg0: i32) -> (i32, i32) {
    %c0_i32 = arith.constant 0 : i32
    %c0_i32_0 = arith.constant 0 : i32
    return %arg0, %c0_i32 : i32, i32
  }
  func.func @transform_7(%arg0: i32) -> (i32, i32) {
    %c0_i32 = arith.constant 0 : i32
    %c0_i32_0 = arith.constant 0 : i32
    return %arg0, %c0_i32 : i32, i32
  }
}

module attributes {stable_mosaic.version = 11 : i64} {
  func.func @attn_ffn_kernel(%arg0: i32, %arg1: i32, %arg2: memref<1x8x32xbf16, #tpu.memory_space<vmem>>, %arg3: memref<1x8x32xbf16, #tpu.memory_space<vmem>>, %arg4: memref<1x8x32xbf16, #tpu.memory_space<vmem>>, %arg5: memref<1x1x8xf32, #tpu.memory_space<vmem>>, %arg6: memref<1x8x32xf32, #tpu.memory_space<vmem>>, %arg7: memref<32x32xbf16, #tpu.memory_space<vmem>>, %arg8: memref<1x32xf32, #tpu.memory_space<vmem>>, %arg9: memref<1x32xf32, #tpu.memory_space<vmem>>, %arg10: memref<1x32xf32, #tpu.memory_space<vmem>>, %arg11: memref<32x64xbf16, #tpu.memory_space<vmem>>, %arg12: memref<1x64xf32, #tpu.memory_space<vmem>>, %arg13: memref<64x32xbf16, #tpu.memory_space<vmem>>, %arg14: memref<1x32xf32, #tpu.memory_space<vmem>>, %arg15: memref<1x8x32xf32, #tpu.memory_space<vmem>>) attributes {dimension_semantics = [#tpu.dimension_semantics<parallel>, #tpu.dimension_semantics<parallel>], iteration_bounds = array<i64: 2, 1>, scalar_prefetch = 0 : i64, scratch_operands = 0 : i64, tpu.core_type = #tpu.core_type<tc>, window_params = [{transform_indices = @transform_0, window_bounds = array<i64: 1, 8, 32>}, {transform_indices = @transform_1, window_bounds = array<i64: 1, 8, 32>}, {transform_indices = @transform_2, window_bounds = array<i64: 1, 8, 32>}, {transform_indices = @transform_3, window_bounds = array<i64: 1, 1, 8>}, {transform_indices = @transform_4, window_bounds = array<i64: 1, 8, 32>}, {pipeline_mode = #tpu.pipeline_mode<synchronous>, transform_indices = @transform_5, window_bounds = array<i64: 32, 32>}, {pipeline_mode = #tpu.pipeline_mode<synchronous>, transform_indices = @transform_6, window_bounds = array<i64: 1, 32>}, {pipeline_mode = #tpu.pipeline_mode<synchronous>, transform_indices = @transform_7, window_bounds = array<i64: 1, 32>}, {pipeline_mode = #tpu.pipeline_mode<synchronous>, transform_indices = @transform_8, window_bounds = array<i64: 1, 32>}, {pipeline_mode = #tpu.pipeline_mode<synchronous>, transform_indices = @transform_9, window_bounds = array<i64: 32, 64>}, {pipeline_mode = #tpu.pipeline_mode<synchronous>, transform_indices = @transform_10, window_bounds = array<i64: 1, 64>}, {pipeline_mode = #tpu.pipeline_mode<synchronous>, transform_indices = @transform_11, window_bounds = array<i64: 64, 32>}, {pipeline_mode = #tpu.pipeline_mode<synchronous>, transform_indices = @transform_12, window_bounds = array<i64: 1, 32>}, {transform_indices = @transform_13, window_bounds = array<i64: 1, 8, 32>}]} {
    %c0 = arith.constant 0 : index
    %c0_0 = arith.constant 0 : index
    %c0_1 = arith.constant 0 : index
    %0 = vector.load %arg5[%c0, %c0_0, %c0_1] : memref<1x1x8xf32, #tpu.memory_space<vmem>>, vector<1x1x8xf32>
    %1 = vector.shape_cast %0 : vector<1x1x8xf32> to vector<1x8xf32>
    %cst = arith.constant 0.000000e+00 : f32
    %2 = vector.broadcast %cst : f32 to vector<1x8xf32>
    %3 = arith.cmpf oeq, %1, %2 : vector<1x8xf32>
    %cst_2 = arith.constant -1.000000e+09 : f32
    %cst_3 = arith.constant 0.000000e+00 : f32
    %4 = vector.broadcast %cst_2 : f32 to vector<1x8xf32>
    %5 = vector.broadcast %cst_3 : f32 to vector<1x8xf32>
    %6 = arith.select %3, %4, %5 : vector<1x8xi1>, vector<1x8xf32>
    %c0_4 = arith.constant 0 : index
    %c0_5 = arith.constant 0 : index
    %c0_6 = arith.constant 0 : index
    %7 = vector.load %arg2[%c0_4, %c0_5, %c0_6] : memref<1x8x32xbf16, #tpu.memory_space<vmem>>, vector<1x8x32xbf16>
    %8 = vector.shape_cast %7 : vector<1x8x32xbf16> to vector<8x32xbf16>
    %9 = arith.extf %8 : vector<8x32xbf16> to vector<8x32xf32>
    %cst_7 = arith.constant 0.353553385 : f32
    %10 = vector.broadcast %cst_7 : f32 to vector<8x32xf32>
    %11 = arith.mulf %9, %10 : vector<8x32xf32>
    %12 = arith.truncf %11 : vector<8x32xf32> to vector<8x32xbf16>
    %13 = vector.extract_strided_slice %12 {offsets = [0, 0], sizes = [8, 8], strides = [1, 1]} : vector<8x32xbf16> to vector<8x8xbf16>
    %c0_8 = arith.constant 0 : index
    %c0_9 = arith.constant 0 : index
    %c0_10 = arith.constant 0 : index
    %14 = vector.load %arg3[%c0_8, %c0_9, %c0_10] : memref<1x8x32xbf16, #tpu.memory_space<vmem>>, vector<1x8x8xbf16>
    %15 = vector.shape_cast %14 : vector<1x8x8xbf16> to vector<8x8xbf16>
    %c0_11 = arith.constant 0 : index
    %c0_12 = arith.constant 0 : index
    %c0_13 = arith.constant 0 : index
    %16 = vector.load %arg4[%c0_11, %c0_12, %c0_13] : memref<1x8x32xbf16, #tpu.memory_space<vmem>>, vector<1x8x8xbf16>
    %17 = vector.shape_cast %16 : vector<1x8x8xbf16> to vector<8x8xbf16>
    %cst_14 = arith.constant dense<0.000000e+00> : vector<8x8xf32>
    %18 = tpu.matmul %13, %15, %cst_14 {dimension_numbers = #tpu.dot_dimension_numbers<[1], [1], [0], [0], [0, 0, 1, 0], [], []>} : vector<8x8xbf16>, vector<8x8xbf16>, vector<8x8xf32> -> vector<8x8xf32>
    %19 = vector.broadcast %6 : vector<1x8xf32> to vector<8x8xf32>
    %20 = arith.addf %18, %19 : vector<8x8xf32>
    %cst_15 = arith.constant dense<0xFF800000> : vector<8xf32>
    %21 = vector.multi_reduction <maximumf>, %20, %cst_15 [1] : vector<8x8xf32> to vector<8xf32>
    %22 = vector.shape_cast %21 : vector<8xf32> to vector<8x1xf32>
    %23 = vector.broadcast %22 : vector<8x1xf32> to vector<8x8xf32>
    %24 = arith.subf %20, %23 : vector<8x8xf32>
    %25 = math.exp %24 : vector<8x8xf32>
    %cst_16 = arith.constant dense<0.000000e+00> : vector<8xf32>
    %26 = vector.multi_reduction <add>, %25, %cst_16 [1] : vector<8x8xf32> to vector<8xf32>
    %27 = vector.shape_cast %26 : vector<8xf32> to vector<8x1xf32>
    %28 = tpu.reciprocal %27 {approx = true} : vector<8x1xf32> -> vector<8x1xf32>
    %29 = vector.broadcast %28 : vector<8x1xf32> to vector<8x8xf32>
    %30 = arith.mulf %25, %29 : vector<8x8xf32>
    %31 = arith.truncf %30 : vector<8x8xf32> to vector<8x8xbf16>
    %cst_17 = arith.constant dense<0.000000e+00> : vector<8x8xf32>
    %32 = tpu.matmul %31, %17, %cst_17 {dimension_numbers = #tpu.dot_dimension_numbers<[1], [0], [0], [1], [0, 0, 1, 1], [], []>} : vector<8x8xbf16>, vector<8x8xbf16>, vector<8x8xf32> -> vector<8x8xf32>
    %33 = vector.extract_strided_slice %12 {offsets = [0, 8], sizes = [8, 8], strides = [1, 1]} : vector<8x32xbf16> to vector<8x8xbf16>
    %c0_18 = arith.constant 0 : index
    %c0_19 = arith.constant 0 : index
    %c8 = arith.constant 8 : index
    %34 = vector.load %arg3[%c0_18, %c0_19, %c8] : memref<1x8x32xbf16, #tpu.memory_space<vmem>>, vector<1x8x8xbf16>
    %35 = vector.shape_cast %34 : vector<1x8x8xbf16> to vector<8x8xbf16>
    %c0_20 = arith.constant 0 : index
    %c0_21 = arith.constant 0 : index
    %c8_22 = arith.constant 8 : index
    %36 = vector.load %arg4[%c0_20, %c0_21, %c8_22] : memref<1x8x32xbf16, #tpu.memory_space<vmem>>, vector<1x8x8xbf16>
    %37 = vector.shape_cast %36 : vector<1x8x8xbf16> to vector<8x8xbf16>
    %cst_23 = arith.constant dense<0.000000e+00> : vector<8x8xf32>
    %38 = tpu.matmul %33, %35, %cst_23 {dimension_numbers = #tpu.dot_dimension_numbers<[1], [1], [0], [0], [0, 0, 1, 0], [], []>} : vector<8x8xbf16>, vector<8x8xbf16>, vector<8x8xf32> -> vector<8x8xf32>
    %39 = vector.broadcast %6 : vector<1x8xf32> to vector<8x8xf32>
    %40 = arith.addf %38, %39 : vector<8x8xf32>
    %cst_24 = arith.constant dense<0xFF800000> : vector<8xf32>
    %41 = vector.multi_reduction <maximumf>, %40, %cst_24 [1] : vector<8x8xf32> to vector<8xf32>
    %42 = vector.shape_cast %41 : vector<8xf32> to vector<8x1xf32>
    %43 = vector.broadcast %42 : vector<8x1xf32> to vector<8x8xf32>
    %44 = arith.subf %40, %43 : vector<8x8xf32>
    %45 = math.exp %44 : vector<8x8xf32>
    %cst_25 = arith.constant dense<0.000000e+00> : vector<8xf32>
    %46 = vector.multi_reduction <add>, %45, %cst_25 [1] : vector<8x8xf32> to vector<8xf32>
    %47 = vector.shape_cast %46 : vector<8xf32> to vector<8x1xf32>
    %48 = tpu.reciprocal %47 {approx = true} : vector<8x1xf32> -> vector<8x1xf32>
    %49 = vector.broadcast %48 : vector<8x1xf32> to vector<8x8xf32>
    %50 = arith.mulf %45, %49 : vector<8x8xf32>
    %51 = arith.truncf %50 : vector<8x8xf32> to vector<8x8xbf16>
    %cst_26 = arith.constant dense<0.000000e+00> : vector<8x8xf32>
    %52 = tpu.matmul %51, %37, %cst_26 {dimension_numbers = #tpu.dot_dimension_numbers<[1], [0], [0], [1], [0, 0, 1, 1], [], []>} : vector<8x8xbf16>, vector<8x8xbf16>, vector<8x8xf32> -> vector<8x8xf32>
    %53 = vector.extract_strided_slice %12 {offsets = [0, 16], sizes = [8, 8], strides = [1, 1]} : vector<8x32xbf16> to vector<8x8xbf16>
    %c0_27 = arith.constant 0 : index
    %c0_28 = arith.constant 0 : index
    %c16 = arith.constant 16 : index
    %54 = vector.load %arg3[%c0_27, %c0_28, %c16] : memref<1x8x32xbf16, #tpu.memory_space<vmem>>, vector<1x8x8xbf16>
    %55 = vector.shape_cast %54 : vector<1x8x8xbf16> to vector<8x8xbf16>
    %c0_29 = arith.constant 0 : index
    %c0_30 = arith.constant 0 : index
    %c16_31 = arith.constant 16 : index
    %56 = vector.load %arg4[%c0_29, %c0_30, %c16_31] : memref<1x8x32xbf16, #tpu.memory_space<vmem>>, vector<1x8x8xbf16>
    %57 = vector.shape_cast %56 : vector<1x8x8xbf16> to vector<8x8xbf16>
    %cst_32 = arith.constant dense<0.000000e+00> : vector<8x8xf32>
    %58 = tpu.matmul %53, %55, %cst_32 {dimension_numbers = #tpu.dot_dimension_numbers<[1], [1], [0], [0], [0, 0, 1, 0], [], []>} : vector<8x8xbf16>, vector<8x8xbf16>, vector<8x8xf32> -> vector<8x8xf32>
    %59 = vector.broadcast %6 : vector<1x8xf32> to vector<8x8xf32>
    %60 = arith.addf %58, %59 : vector<8x8xf32>
    %cst_33 = arith.constant dense<0xFF800000> : vector<8xf32>
    %61 = vector.multi_reduction <maximumf>, %60, %cst_33 [1] : vector<8x8xf32> to vector<8xf32>
    %62 = vector.shape_cast %61 : vector<8xf32> to vector<8x1xf32>
    %63 = vector.broadcast %62 : vector<8x1xf32> to vector<8x8xf32>
    %64 = arith.subf %60, %63 : vector<8x8xf32>
    %65 = math.exp %64 : vector<8x8xf32>
    %cst_34 = arith.constant dense<0.000000e+00> : vector<8xf32>
    %66 = vector.multi_reduction <add>, %65, %cst_34 [1] : vector<8x8xf32> to vector<8xf32>
    %67 = vector.shape_cast %66 : vector<8xf32> to vector<8x1xf32>
    %68 = tpu.reciprocal %67 {approx = true} : vector<8x1xf32> -> vector<8x1xf32>
    %69 = vector.broadcast %68 : vector<8x1xf32> to vector<8x8xf32>
    %70 = arith.mulf %65, %69 : vector<8x8xf32>
    %71 = arith.truncf %70 : vector<8x8xf32> to vector<8x8xbf16>
    %cst_35 = arith.constant dense<0.000000e+00> : vector<8x8xf32>
    %72 = tpu.matmul %71, %57, %cst_35 {dimension_numbers = #tpu.dot_dimension_numbers<[1], [0], [0], [1], [0, 0, 1, 1], [], []>} : vector<8x8xbf16>, vector<8x8xbf16>, vector<8x8xf32> -> vector<8x8xf32>
    %73 = vector.extract_strided_slice %12 {offsets = [0, 24], sizes = [8, 8], strides = [1, 1]} : vector<8x32xbf16> to vector<8x8xbf16>
    %c0_36 = arith.constant 0 : index
    %c0_37 = arith.constant 0 : index
    %c24 = arith.constant 24 : index
    %74 = vector.load %arg3[%c0_36, %c0_37, %c24] : memref<1x8x32xbf16, #tpu.memory_space<vmem>>, vector<1x8x8xbf16>
    %75 = vector.shape_cast %74 : vector<1x8x8xbf16> to vector<8x8xbf16>
    %c0_38 = arith.constant 0 : index
    %c0_39 = arith.constant 0 : index
    %c24_40 = arith.constant 24 : index
    %76 = vector.load %arg4[%c0_38, %c0_39, %c24_40] : memref<1x8x32xbf16, #tpu.memory_space<vmem>>, vector<1x8x8xbf16>
    %77 = vector.shape_cast %76 : vector<1x8x8xbf16> to vector<8x8xbf16>
    %cst_41 = arith.constant dense<0.000000e+00> : vector<8x8xf32>
    %78 = tpu.matmul %73, %75, %cst_41 {dimension_numbers = #tpu.dot_dimension_numbers<[1], [1], [0], [0], [0, 0, 1, 0], [], []>} : vector<8x8xbf16>, vector<8x8xbf16>, vector<8x8xf32> -> vector<8x8xf32>
    %79 = vector.broadcast %6 : vector<1x8xf32> to vector<8x8xf32>
    %80 = arith.addf %78, %79 : vector<8x8xf32>
    %cst_42 = arith.constant dense<0xFF800000> : vector<8xf32>
    %81 = vector.multi_reduction <maximumf>, %80, %cst_42 [1] : vector<8x8xf32> to vector<8xf32>
    %82 = vector.shape_cast %81 : vector<8xf32> to vector<8x1xf32>
    %83 = vector.broadcast %82 : vector<8x1xf32> to vector<8x8xf32>
    %84 = arith.subf %80, %83 : vector<8x8xf32>
    %85 = math.exp %84 : vector<8x8xf32>
    %cst_43 = arith.constant dense<0.000000e+00> : vector<8xf32>
    %86 = vector.multi_reduction <add>, %85, %cst_43 [1] : vector<8x8xf32> to vector<8xf32>
    %87 = vector.shape_cast %86 : vector<8xf32> to vector<8x1xf32>
    %88 = tpu.reciprocal %87 {approx = true} : vector<8x1xf32> -> vector<8x1xf32>
    %89 = vector.broadcast %88 : vector<8x1xf32> to vector<8x8xf32>
    %90 = arith.mulf %85, %89 : vector<8x8xf32>
    %91 = arith.truncf %90 : vector<8x8xf32> to vector<8x8xbf16>
    %cst_44 = arith.constant dense<0.000000e+00> : vector<8x8xf32>
    %92 = tpu.matmul %91, %77, %cst_44 {dimension_numbers = #tpu.dot_dimension_numbers<[1], [0], [0], [1], [0, 0, 1, 1], [], []>} : vector<8x8xbf16>, vector<8x8xbf16>, vector<8x8xf32> -> vector<8x8xf32>
    %93 = tpu.concatenate %32, %52, %72, %92 in 1 : vector<8x8xf32>, vector<8x8xf32>, vector<8x8xf32>, vector<8x8xf32> -> vector<8x32xf32>
    %94 = arith.truncf %93 : vector<8x32xf32> to vector<8x32xbf16>
    %c0_45 = arith.constant 0 : index
    %c0_46 = arith.constant 0 : index
    %95 = vector.load %arg7[%c0_45, %c0_46] : memref<32x32xbf16, #tpu.memory_space<vmem>>, vector<32x32xbf16>
    %cst_47 = arith.constant dense<0.000000e+00> : vector<8x32xf32>
    %96 = tpu.matmul %94, %95, %cst_47 {dimension_numbers = #tpu.dot_dimension_numbers<[1], [0], [0], [1], [0, 0, 1, 1], [], []>} : vector<8x32xbf16>, vector<32x32xbf16>, vector<8x32xf32> -> vector<8x32xf32>
    %c0_48 = arith.constant 0 : index
    %c0_49 = arith.constant 0 : index
    %97 = vector.load %arg8[%c0_48, %c0_49] : memref<1x32xf32, #tpu.memory_space<vmem>>, vector<1x32xf32>
    %98 = vector.broadcast %97 : vector<1x32xf32> to vector<8x32xf32>
    %99 = arith.addf %96, %98 : vector<8x32xf32>
    %c0_50 = arith.constant 0 : index
    %c0_51 = arith.constant 0 : index
    %c0_52 = arith.constant 0 : index
    %100 = vector.load %arg6[%c0_50, %c0_51, %c0_52] : memref<1x8x32xf32, #tpu.memory_space<vmem>>, vector<1x8x32xf32>
    %101 = vector.shape_cast %100 : vector<1x8x32xf32> to vector<8x32xf32>
    %102 = arith.addf %101, %99 : vector<8x32xf32>
    %c0_53 = arith.constant 0 : index
    %c0_54 = arith.constant 0 : index
    %103 = vector.load %arg9[%c0_53, %c0_54] : memref<1x32xf32, #tpu.memory_space<vmem>>, vector<1x32xf32>
    %c0_55 = arith.constant 0 : index
    %c0_56 = arith.constant 0 : index
    %104 = vector.load %arg10[%c0_55, %c0_56] : memref<1x32xf32, #tpu.memory_space<vmem>>, vector<1x32xf32>
    %cst_57 = arith.constant dense<0.000000e+00> : vector<8xf32>
    %105 = vector.multi_reduction <add>, %102, %cst_57 [1] : vector<8x32xf32> to vector<8xf32>
    %106 = vector.shape_cast %105 : vector<8xf32> to vector<8x1xf32>
    %cst_58 = arith.constant 3.200000e+01 : f32
    %107 = vector.broadcast %cst_58 : f32 to vector<8x1xf32>
    %108 = arith.divf %106, %107 : vector<8x1xf32>
    %109 = vector.broadcast %108 : vector<8x1xf32> to vector<8x32xf32>
    %110 = arith.subf %102, %109 : vector<8x32xf32>
    %111 = arith.mulf %110, %110 : vector<8x32xf32>
    %cst_59 = arith.constant dense<0.000000e+00> : vector<8xf32>
    %112 = vector.multi_reduction <add>, %111, %cst_59 [1] : vector<8x32xf32> to vector<8xf32>
    %113 = vector.shape_cast %112 : vector<8xf32> to vector<8x1xf32>
    %cst_60 = arith.constant 3.100000e+01 : f32
    %114 = vector.broadcast %cst_60 : f32 to vector<8x1xf32>
    %115 = arith.divf %113, %114 : vector<8x1xf32>
    %116 = vector.broadcast %108 : vector<8x1xf32> to vector<8x32xf32>
    %117 = arith.subf %102, %116 : vector<8x32xf32>
    %118 = vector.broadcast %103 : vector<1x32xf32> to vector<8x32xf32>
    %119 = arith.mulf %118, %117 : vector<8x32xf32>
    %120 = math.sqrt %115 : vector<8x1xf32>
    %cst_61 = arith.constant 9.99999997E-7 : f32
    %121 = vector.broadcast %cst_61 : f32 to vector<8x1xf32>
    %122 = arith.addf %120, %121 : vector<8x1xf32>
    %123 = vector.broadcast %122 : vector<8x1xf32> to vector<8x32xf32>
    %124 = arith.divf %119, %123 : vector<8x32xf32>
    %125 = vector.broadcast %104 : vector<1x32xf32> to vector<8x32xf32>
    %126 = arith.addf %124, %125 : vector<8x32xf32>
    %127 = arith.truncf %126 : vector<8x32xf32> to vector<8x32xbf16>
    %c0_62 = arith.constant 0 : index
    %c0_63 = arith.constant 0 : index
    %128 = vector.load %arg11[%c0_62, %c0_63] : memref<32x64xbf16, #tpu.memory_space<vmem>>, vector<32x64xbf16>
    %cst_64 = arith.constant dense<0.000000e+00> : vector<8x64xf32>
    %129 = tpu.matmul %127, %128, %cst_64 {dimension_numbers = #tpu.dot_dimension_numbers<[1], [0], [0], [1], [0, 0, 1, 1], [], []>} : vector<8x32xbf16>, vector<32x64xbf16>, vector<8x64xf32> -> vector<8x64xf32>
    %c0_65 = arith.constant 0 : index
    %c0_66 = arith.constant 0 : index
    %130 = vector.load %arg12[%c0_65, %c0_66] : memref<1x64xf32, #tpu.memory_space<vmem>>, vector<1x64xf32>
    %131 = vector.broadcast %130 : vector<1x64xf32> to vector<8x64xf32>
    %132 = arith.addf %129, %131 : vector<8x64xf32>
    %cst_67 = arith.constant 0.000000e+00 : f32
    %133 = vector.broadcast %cst_67 : f32 to vector<8x64xf32>
    %134 = arith.maximumf %132, %133 : vector<8x64xf32>
    %135 = arith.truncf %134 : vector<8x64xf32> to vector<8x64xbf16>
    %c0_68 = arith.constant 0 : index
    %c0_69 = arith.constant 0 : index
    %136 = vector.load %arg13[%c0_68, %c0_69] : memref<64x32xbf16, #tpu.memory_space<vmem>>, vector<64x32xbf16>
    %cst_70 = arith.constant dense<0.000000e+00> : vector<8x32xf32>
    %137 = tpu.matmul %135, %136, %cst_70 {dimension_numbers = #tpu.dot_dimension_numbers<[1], [0], [0], [1], [0, 0, 1, 1], [], []>} : vector<8x64xbf16>, vector<64x32xbf16>, vector<8x32xf32> -> vector<8x32xf32>
    %c0_71 = arith.constant 0 : index
    %c0_72 = arith.constant 0 : index
    %138 = vector.load %arg14[%c0_71, %c0_72] : memref<1x32xf32, #tpu.memory_space<vmem>>, vector<1x32xf32>
    %139 = vector.broadcast %138 : vector<1x32xf32> to vector<8x32xf32>
    %140 = arith.addf %137, %139 : vector<8x32xf32>
    %141 = arith.addf %102, %140 : vector<8x32xf32>
    %c0_73 = arith.constant 0 : index
    %c0_74 = arith.constant 0 : index
    %c0_75 = arith.constant 0 : index
    %142 = vector.load %arg15[%c0_73, %c0_74, %c0_75] : memref<1x8x32xf32, #tpu.memory_space<vmem>>, vector<1x8x32xf32>
    %143 = vector.shape_cast %142 : vector<1x8x32xf32> to vector<8x32xf32>
    %144 = vector.shape_cast %141 : vector<8x32xf32> to vector<1x8x32xf32>
    tpu.vector_store %arg15[%c0_73, %c0_74, %c0_75], %144 {strides = array<i32>} : memref<1x8x32xf32, #tpu.memory_space<vmem>>, vector<1x8x32xf32>,
    return
  }
  func.func @transform_0(%arg0: i32, %arg1: i32) -> (i32, i32, i32) {
    %c0_i32 = arith.constant 0 : i32
    %c0_i32_0 = arith.constant 0 : i32
    return %arg0, %arg1, %c0_i32 : i32, i32, i32
  }
  func.func @transform_1(%arg0: i32, %arg1: i32) -> (i32, i32, i32) {
    %c0_i32 = arith.constant 0 : i32
    %c0_i32_0 = arith.constant 0 : i32
    %c0_i32_1 = arith.constant 0 : i32
    return %arg0, %c0_i32, %c0_i32_0 : i32, i32, i32
  }
  func.func @transform_2(%arg0: i32, %arg1: i32) -> (i32, i32, i32) {
    %c0_i32 = arith.constant 0 : i32
    %c0_i32_0 = arith.constant 0 : i32
    %c0_i32_1 = arith.constant 0 : i32
    return %arg0, %c0_i32, %c0_i32_0 : i32, i32, i32
  }
  func.func @transform_3(%arg0: i32, %arg1: i32) -> (i32, i32, i32) {
    %c0_i32 = arith.constant 0 : i32
    %c0_i32_0 = arith.constant 0 : i32
    %c0_i32_1 = arith.constant 0 : i32
    return %arg0, %c0_i32, %c0_i32_0 : i32, i32, i32
  }
  func.func @transform_4(%arg0: i32, %arg1: i32) -> (i32, i32, i32) {
    %c0_i32 = arith.constant 0 : i32
    %c0_i32_0 = arith.constant 0 : i32
    return %arg0, %arg1, %c0_i32 : i32, i32, i32
  }
  func.func @transform_5(%arg0: i32, %arg1: i32) -> (i32, i32) {
    %c0_i32 = arith.constant 0 : i32
    %c0_i32_0 = arith.constant 0 : i32
    %c0_i32_1 = arith.constant 0 : i32
    return %c0_i32, %c0_i32_0 : i32, i32
  }
  func.func @transform_6(%arg0: i32, %arg1: i32) -> (i32, i32) {
    %c0_i32 = arith.constant 0 : i32
    %c0_i32_0 = arith.constant 0 : i32
    %c0_i32_1 = arith.constant 0 : i32
    return %c0_i32, %c0_i32_0 : i32, i32
  }
  func.func @transform_7(%arg0: i32, %arg1: i32) -> (i32, i32) {
    %c0_i32 = arith.constant 0 : i32
    %c0_i32_0 = arith.constant 0 : i32
    %c0_i32_1 = arith.constant 0 : i32
    return %c0_i32, %c0_i32_0 : i32, i32
  }
  func.func @transform_8(%arg0: i32, %arg1: i32) -> (i32, i32) {
    %c0_i32 = arith.constant 0 : i32
    %c0_i32_0 = arith.constant 0 : i32
    %c0_i32_1 = arith.constant 0 : i32
    return %c0_i32, %c0_i32_0 : i32, i32
  }
  func.func @transform_9(%arg0: i32, %arg1: i32) -> (i32, i32) {
    %c0_i32 = arith.constant 0 : i32
    %c0_i32_0 = arith.constant 0 : i32
    %c0_i32_1 = arith.constant 0 : i32
    return %c0_i32, %c0_i32_0 : i32, i32
  }
  func.func @transform_10(%arg0: i32, %arg1: i32) -> (i32, i32) {
    %c0_i32 = arith.constant 0 : i32
    %c0_i32_0 = arith.constant 0 : i32
    %c0_i32_1 = arith.constant 0 : i32
    return %c0_i32, %c0_i32_0 : i32, i32
  }
  func.func @transform_11(%arg0: i32, %arg1: i32) -> (i32, i32) {
    %c0_i32 = arith.constant 0 : i32
    %c0_i32_0 = arith.constant 0 : i32
    %c0_i32_1 = arith.constant 0 : i32
    return %c0_i32, %c0_i32_0 : i32, i32
  }
  func.func @transform_12(%arg0: i32, %arg1: i32) -> (i32, i32) {
    %c0_i32 = arith.constant 0 : i32
    %c0_i32_0 = arith.constant 0 : i32
    %c0_i32_1 = arith.constant 0 : i32
    return %c0_i32, %c0_i32_0 : i32, i32
  }
  func.func @transform_13(%arg0: i32, %arg1: i32) -> (i32, i32, i32) {
    %c0_i32 = arith.constant 0 : i32
    %c0_i32_0 = arith.constant 0 : i32
    return %arg0, %arg1, %c0_i32 : i32, i32, i32
  }
}

module attributes {stable_mosaic.version = 11 : i64} {
  func.func @layernorm_kernel(%arg0: i32, %arg1: memref<16x32xf32, #tpu.memory_space<vmem>>, %arg2: memref<1x32xf32, #tpu.memory_space<vmem>>, %arg3: memref<1x32xf32, #tpu.memory_space<vmem>>, %arg4: memref<16x32xf32, #tpu.memory_space<vmem>>) attributes {dimension_semantics = [#tpu.dimension_semantics<parallel>], iteration_bounds = array<i64: 1>, scalar_prefetch = 0 : i64, scratch_operands = 0 : i64, tpu.core_type = #tpu.core_type<tc>, window_params = [{transform_indices = @transform_0, window_bounds = array<i64: 16, 32>}, {pipeline_mode = #tpu.pipeline_mode<synchronous>, transform_indices = @transform_1, window_bounds = array<i64: 1, 32>}, {pipeline_mode = #tpu.pipeline_mode<synchronous>, transform_indices = @transform_2, window_bounds = array<i64: 1, 32>}, {transform_indices = @transform_3, window_bounds = array<i64: 16, 32>}]} {
    %c0 = arith.constant 0 : index
    %c0_0 = arith.constant 0 : index
    %0 = vector.load %arg1[%c0, %c0_0] : memref<16x32xf32, #tpu.memory_space<vmem>>, vector<16x32xf32>
    %c0_1 = arith.constant 0 : index
    %c0_2 = arith.constant 0 : index
    %1 = vector.load %arg2[%c0_1, %c0_2] : memref<1x32xf32, #tpu.memory_space<vmem>>, vector<1x32xf32>
    %c0_3 = arith.constant 0 : index
    %c0_4 = arith.constant 0 : index
    %2 = vector.load %arg3[%c0_3, %c0_4] : memref<1x32xf32, #tpu.memory_space<vmem>>, vector<1x32xf32>
    %cst = arith.constant dense<0.000000e+00> : vector<16xf32>
    %3 = vector.multi_reduction <add>, %0, %cst [1] : vector<16x32xf32> to vector<16xf32>
    %4 = vector.shape_cast %3 : vector<16xf32> to vector<16x1xf32>
    %cst_5 = arith.constant 3.200000e+01 : f32
    %5 = vector.broadcast %cst_5 : f32 to vector<16x1xf32>
    %6 = arith.divf %4, %5 : vector<16x1xf32>
    %7 = vector.broadcast %6 : vector<16x1xf32> to vector<16x32xf32>
    %8 = arith.subf %0, %7 : vector<16x32xf32>
    %9 = arith.mulf %8, %8 : vector<16x32xf32>
    %cst_6 = arith.constant dense<0.000000e+00> : vector<16xf32>
    %10 = vector.multi_reduction <add>, %9, %cst_6 [1] : vector<16x32xf32> to vector<16xf32>
    %11 = vector.shape_cast %10 : vector<16xf32> to vector<16x1xf32>
    %cst_7 = arith.constant 3.100000e+01 : f32
    %12 = vector.broadcast %cst_7 : f32 to vector<16x1xf32>
    %13 = arith.divf %11, %12 : vector<16x1xf32>
    %14 = vector.broadcast %6 : vector<16x1xf32> to vector<16x32xf32>
    %15 = arith.subf %0, %14 : vector<16x32xf32>
    %16 = vector.broadcast %1 : vector<1x32xf32> to vector<16x32xf32>
    %17 = arith.mulf %16, %15 : vector<16x32xf32>
    %18 = math.sqrt %13 : vector<16x1xf32>
    %cst_8 = arith.constant 9.99999997E-7 : f32
    %19 = vector.broadcast %cst_8 : f32 to vector<16x1xf32>
    %20 = arith.addf %18, %19 : vector<16x1xf32>
    %21 = vector.broadcast %20 : vector<16x1xf32> to vector<16x32xf32>
    %22 = arith.divf %17, %21 : vector<16x32xf32>
    %23 = vector.broadcast %2 : vector<1x32xf32> to vector<16x32xf32>
    %24 = arith.addf %22, %23 : vector<16x32xf32>
    %c0_9 = arith.constant 0 : index
    %c0_10 = arith.constant 0 : index
    %25 = vector.load %arg4[%c0_9, %c0_10] : memref<16x32xf32, #tpu.memory_space<vmem>>, vector<16x32xf32>
    tpu.vector_store %arg4[%c0_9, %c0_10], %24 {strides = array<i32>} : memref<16x32xf32, #tpu.memory_space<vmem>>, vector<16x32xf32>,
    return
  }
  func.func @transform_0(%arg0: i32) -> (i32, i32) {
    %c0_i32 = arith.constant 0 : i32
    %c0_i32_0 = arith.constant 0 : i32
    return %arg0, %c0_i32 : i32, i32
  }
  func.func @transform_1(%arg0: i32) -> (i32, i32) {
    %c0_i32 = arith.constant 0 : i32
    %c0_i32_0 = arith.constant 0 : i32
    %c0_i32_1 = arith.constant 0 : i32
    return %c0_i32, %c0_i32_0 : i32, i32
  }
  func.func @transform_2(%arg0: i32) -> (i32, i32) {
    %c0_i32 = arith.constant 0 : i32
    %c0_i32_0 = arith.constant 0 : i32
    %c0_i32_1 = arith.constant 0 : i32
    return %c0_i32, %c0_i32_0 : i32, i32
  }
  func.func @transform_3(%arg0: i32) -> (i32, i32) {
    %c0_i32 = arith.constant 0 : i32
    %c0_i32_0 = arith.constant 0 : i32
    return %arg0, %c0_i32 : i32, i32
  }
}

</mosaic_0001>

<bundles_post_ra>
// kernel: encoder_fwd.7
= control target key start
LH: loop header
LB: loop body
LE: loop exit
PB: predicated region body
PF: predicated region fallthrough
CT: control target
= control target key end

     0   :  { %vm28_vm0 = vcmask 261120   ;;  %v232_v4 = vmov 32.0   ;;  %v233_v24 = vmov 31.0   ;;  %vm169_vm15 = vcmask 257024   ;;  %s235_s14 = smov 96   ;;  %s332_s0 = inlined_call_operand.vmem [shape: f32[16,32], index: 0, kind: input, shape index: {}]   ;;  %s333_s1 = inlined_call_operand.vmem [shape: f32[1,32], index: 1, kind: input, shape index: {}]   ;;  %s334_s2 = inlined_call_operand.vmem [shape: f32[1,32], index: 2, kind: input, shape index: {}]   ;;  %s335_s4 = inlined_call_operand.vmem [shape: f32[1,96], index: 4, kind: input, shape index: {}]   ;;  %s336_s3 = inlined_call_operand.vmem [shape: bf16[32,96], index: 3, kind: input, shape index: {}]   ;;  %s337_s5 = inlined_call_operand.vmem [shape: bf16[16,32], index: 5, kind: output, shape index: {0}]   ;;  %s338_s6 = inlined_call_operand.vmem [shape: bf16[16,32], index: 6, kind: output, shape index: {1}]   ;;  %s339_s7 = inlined_call_operand.vmem [shape: bf16[16,32], index: 7, kind: output, shape index: {2}]  }
   0x1   :  { %v24_v0 = vld [vmem:[%s332_s0] sm:$0xff]  ;;  %v25_v2 = vld [vmem:[%s332_s0 + $0x8] sm:$0xff]  ;;  %220 = vrcp.f32 %v232_v4 }
   0x2   :  { %v29_v1 = vsel %vm28_vm0, %v24_v0, 0.0  ;;  %v32_v3 = vsel %vm28_vm0, %v25_v2, 0.0  ;;  %v217_v12 = vld [vmem:[%s333_s1] ss:$0 sm:$0xff]  ;;  %222 = vrcp.f32 %v233_v24  ;;  %v212_v31 = vld [vmem:[%s336_s3 + $0x8] sm:$0xff] }
   0x3   :  { %30 = vadd.xlane.f32.xlu0 %v29_v1  ;;  %159 = vmatpush.bf16.msra.mxu0 %v212_v31  ;;  %v211_v33 = vld [vmem:[%s336_s3] sm:$0xff] }
   0x7   :  { %v221_v5 = vpop.eup %220  ;;  %160 = vmatpush.bf16.msra.mxu0 %v211_v33 }
   0x8   :  { %v36_v6 = vmul.f32 32.0, %v221_v5  ;;  %vm40_vm1 = vweird.f32 %v221_v5  ;;  %v223_v25 = vpop.eup %222 }
   0x9   :  { %v55_v26 = vmul.f32 31.0, %v223_v25  ;;  %vm59_vm2 = vweird.f32 %v223_v25 }
   0xa   :  { %v37_v7 = vsub.f32 1.0, %v36_v6 }
   0xb   :  { %33 = vadd.xlane.f32.xlu0 %v32_v3  ;;  %v56_v27 = vsub.f32 1.0, %v55_v26 }
   0xc   :  { %v38_v8 = vmul.f32 %v221_v5, %v37_v7 }
   0xd   :  { %v57_v28 = vmul.f32 %v223_v25, %v56_v27 }
   0xe   :  { %v39_v9 = vadd.f32 %v221_v5, %v38_v8 }
   0xf   :  { %v58_v29 = vadd.f32 %v223_v25, %v57_v28 }
  0x10   :  { %v41_v10 = vsel %vm40_vm1, %v221_v5, %v39_v9 }
  0x11   :  { %v60_v30 = vsel %vm59_vm2, %v223_v25, %v58_v29 }
  0x76   :  { %v31_v11 = vpop.xlane.xlu0 %30 }
  0x77   :  { %v42_v13 = vmul.f32 %v41_v10, %v31_v11 }
  0x79   :  { %v44_v14 = vsub.f32 %v24_v0, %v42_v13 }
  0x7b   :  { %v287_v15 = vmul.f32 %v217_v12, %v44_v14  ;;  %v46_v16 = vmul.f32 %v44_v14, %v44_v14 }
  0x7d   :  { %v48_v17 = vsel %vm28_vm0, %v46_v16, 0.0  ;;  %v218_v16 = vld [vmem:[%s334_s2] ss:$0 sm:$0xff]  ;;  %s234_s2 = smov 64  }
  0x7e   :  { %49 = vadd.xlane.f32.xlu1 %v48_v17  ;;  %v34_v18 = vpop.xlane.xlu0 %33 }
  0x7f   :  { %v43_v19 = vmul.f32 %v41_v10, %v34_v18 }
  0x81   :  { %v45_v20 = vsub.f32 %v25_v2, %v43_v19 }
  0x83   :  { %v290_v21 = vmul.f32 %v217_v12, %v45_v20  ;;  %v47_v22 = vmul.f32 %v45_v20, %v45_v20 }
  0x85   :  { %v51_v23 = vsel %vm28_vm0, %v47_v22, 0.0 }
  0x86   :  { %52 = vadd.xlane.f32.xlu1 %v51_v23  ;;  %v219_v23 = vld [vmem:[%s335_s4] ss:$0 sm:$0xff] }
  0xf1   :  { %v50_v32 = vpop.xlane.xlu1 %49 }
  0xf2   :  { %v61_v34 = vmul.f32 %v60_v30, %v50_v32 }
  0xf4   :  { %224 = vrsqrt.f32 %v61_v34  ;;  %vm75_vm3 = vcmp.eq.f32.partialorder %v61_v34, inf  ;;  %v78_v47 = vand.u32 2147483648, %v61_v34  ;;  %vm77_vm4 = vcmp.eq.f32.partialorder %v61_v34, 0.0 }
  0xf9   :  { %v53_v35 = vpop.xlane.xlu1 %52 }
  0xfa   :  { %v225_v36 = vpop.eup %224  ;;  %v62_v37 = vmul.f32 %v60_v30, %v53_v35 }
  0xfb   :  { %v69_v38 = vmul.f32 %v225_v36, %v61_v34 }
  0xfc   :  { %226 = vrsqrt.f32 %v62_v37  ;;  %vm87_vm5 = vcmp.eq.f32.partialorder %v62_v37, inf  ;;  %v90_v55 = vand.u32 2147483648, %v62_v37  ;;  %vm89_vm6 = vcmp.eq.f32.partialorder %v62_v37, 0.0 }
  0xfd   :  { %v70_v39 = vmul.f32 %v225_v36, %v69_v38 }
  0xff   :  { %v71_v40 = vmul.f32 0.5, %v70_v39 }
 0x101   :  { %v72_v41 = vsub.f32 1.5, %v71_v40 }
 0x102   :  { %v227_v42 = vpop.eup %226 }
 0x103   :  { %v73_v43 = vmul.f32 %v225_v36, %v72_v41  ;;  %v81_v44 = vmul.f32 %v227_v42, %v62_v37 }
 0x105   :  { %v74_v45 = vmul.f32 %v73_v43, %v61_v34  ;;  %v82_v46 = vmul.f32 %v227_v42, %v81_v44 }
 0x107   :  { %v76_v48 = vsel %vm75_vm3, %v61_v34, %v74_v45  ;;  %v83_v49 = vmul.f32 0.5, %v82_v46 }
 0x108   :  { %v79_v50 = vsel %vm77_vm4, %v78_v47, %v76_v48 }
 0x109   :  { %v84_v51 = vsub.f32 1.5, %v83_v49  ;;  %v92_v52 = vadd.f32 1e-06, %v79_v50 }
 0x10b   :  { %v85_v53 = vmul.f32 %v227_v42, %v84_v51  ;;  %228 = vrcp.f32 %v92_v52  ;;  %v105_v1 = vand.u32 2147483648, %v92_v52  ;;  %vm99_vm8 = vweird.f32 %v92_v52 }
 0x10c   :  { %v103_v2 = vand.u32 2147483647, %v92_v52 }
 0x10d   :  { %v86_v54 = vmul.f32 %v85_v53, %v62_v37  ;;  %v106_v6 = vor.u32 1.1754944e-38, %v105_v1 }
 0x10e   :  { %vm104_vm10 = vcmp.eq.f32.partialorder %v103_v2, 8.507059e+37 }
 0x10f   :  { %v88_v56 = vsel %vm87_vm5, %v62_v37, %v86_v54 }
 0x110   :  { %v91_v57 = vsel %vm89_vm6, %v90_v55, %v88_v56 }
 0x111   :  { %v229_v58 = vpop.eup %228  ;;  %v93_v59 = vadd.f32 1e-06, %v91_v57 }
 0x112   :  { %v95_v60 = vmul.f32 %v229_v58, %v92_v52  ;;  %vm100_vm7 = vweird.f32 %v229_v58 }
 0x113   :  { %230 = vrcp.f32 %v93_v59  ;;  %vm101_vm9 = vmor %vm99_vm8, %vm100_vm7  ;;  %v120_v7 = vand.u32 2147483648, %v93_v59  ;;  %v118_v9 = vand.u32 2147483647, %v93_v59  ;;  %vm114_vm12 = vweird.f32 %v93_v59 }
 0x114   :  { %v96_v61 = vsub.f32 1.0, %v95_v60 }
 0x115   :  { %v121_v12 = vor.u32 1.1754944e-38, %v120_v7  ;;  %vm119_vm14 = vcmp.eq.f32.partialorder %v118_v9, 8.507059e+37 }
 0x116   :  { %v97_v62 = vmul.f32 %v229_v58, %v96_v61 }
 0x118   :  { %v98_v63 = vadd.f32 %v229_v58, %v97_v62 }
 0x119   :  { %v231_v0 = vpop.eup %230 }
 0x11a   :  { %v110_v3 = vmul.f32 %v231_v0, %v93_v59  ;;  %v102_v4 = vsel %vm101_vm9, %v229_v58, %v98_v63  ;;  %vm115_vm11 = vweird.f32 %v231_v0 }
 0x11b   :  { %v107_v10 = vsel %vm104_vm10, %v106_v6, %v102_v4  ;;  %vm116_vm13 = vmor %vm114_vm12, %vm115_vm11 }
 0x11c   :  { %v111_v5 = vsub.f32 1.0, %v110_v3  ;;  %v108_v13 = vmul.f32 %v107_v10, %v287_v15 }
 0x11e   :  { %v112_v8 = vmul.f32 %v231_v0, %v111_v5  ;;  %v127_v19 = vadd.f32 %v218_v16, %v108_v13 }
 0x120   :  { %v113_v11 = vadd.f32 %v231_v0, %v112_v8 }
 0x122   :  { %v117_v14 = vsel %vm116_vm13, %v231_v0, %v113_v11 }
 0x123   :  { %v122_v17 = vsel %vm119_vm14, %v121_v12, %v117_v14 }
 0x124   :  { %v123_v18 = vmul.f32 %v122_v17, %v290_v21 }
 0x126   :  { %v128_v20 = vadd.f32 %v218_v16, %v123_v18 }
 0x128   :  { %v129_v22 = vpack.c.bf16 %v128_v20, %v127_v19 }
 0x12a   :  { %210 = vmatmul.msk.bf16.vlgmr.msra.gmra.mxu0 %vm28_vm0, %v129_v22 }
 0x1a7   :  { %v162_v24 = vpop.f32.mrf.mxu0 }
 0x1a8   :  { %v163_v15 = vadd.f32 %v219_v23, %v162_v24 }
 0x1aa   :  { %v167_v25 = vpack.c.bf16 %v163_v15, %v163_v15 }
 0x1ac   :  { %170 = vst.msk [vmem:[%s337_s5] sm:$0xf] %vm169_vm15, %v167_v25  ;;  %182 = vrot.lane.b32.xlu0 %v167_v25, %s234_s2  ;;  %174 = vrot.lane.b32.xlu2 %v167_v25, %s235_s14 }
 0x1af   :  { %v164_v21 = vpop.f32.mrf.mxu0 }
 0x1b0   :  { %v165_v26 = vadd.f32 %v219_v23, %v164_v21 }
 0x1b2   :  { %v168_v27 = vpack.c.bf16 %v165_v26, %v165_v26 }
 0x1b4   :  { %171 = vst.msk [vmem:[%s337_s5 + $0x4] sm:$0xf] %vm169_vm15, %v168_v27  ;;  %184 = vrot.lane.b32.xlu1 %v168_v27, %s234_s2  ;;  %176 = vrot.lane.b32.xlu2 %v168_v27, %s235_s14 }
 0x206   :  { %v175_v28 = vpop.permute.xlu2 %174 }
 0x207   :  { %180 = vst.msk [vmem:[%s338_s6] sm:$0xf] %vm169_vm15, %v175_v28 }
 0x20e   :  { %v177_v29 = vpop.permute.xlu2 %176 }
 0x20f   :  { %181 = vst.msk [vmem:[%s338_s6 + $0x4] sm:$0xf] %vm169_vm15, %v177_v29 }
 0x21e   :  { %v183_v30 = vpop.permute.xlu0 %182 }
 0x21f   :  { %188 = vst.msk [vmem:[%s339_s7] sm:$0xf] %vm169_vm15, %v183_v30 }
 0x226   :  { %v185_v31 = vpop.permute.xlu1 %184 }
 0x227   :  { %189 = vst.msk [vmem:[%s339_s7 + $0x4] sm:$0xf] %vm169_vm15, %v185_v31 }

// kernel: encoder_fwd.5
= control target key start
LH: loop header
LB: loop body
LE: loop exit
PB: predicated region body
PF: predicated region fallthrough
CT: control target
= control target key end

     0   :  { %13 = vsyncpa [#allocation3], 0  ;;  %s277_s27 = smov [#allocation2]   ;;  %s278_s29 = smov 64   ;;  %s384_s0 = inlined_call_operand.vmem [shape: f32[16,32], index: 0, kind: input, shape index: {}]   ;;  %s385_s1 = inlined_call_operand.vmem [shape: f32[1,32], index: 1, kind: input, shape index: {}]   ;;  %s386_s2 = inlined_call_operand.vmem [shape: f32[1,32], index: 2, kind: input, shape index: {}]   ;;  %s387_s3 = inlined_call_operand.hbm [shape: bf16[32,96], index: 3, kind: input, shape index: {}]   ;;  %s388_s4 = inlined_call_operand.vmem [shape: f32[1,96], index: 4, kind: input, shape index: {}]   ;;  %s389_s5 = inlined_call_operand.vmem [shape: bf16[16,32], index: 5, kind: output, shape index: {0}]   ;;  %s390_s6 = inlined_call_operand.vmem [shape: bf16[16,32], index: 6, kind: output, shape index: {1}]   ;;  %s391_s7 = inlined_call_operand.vmem [shape: bf16[16,32], index: 7, kind: output, shape index: {2}]  }
   0x1   :  { %s24_s26 = sshll.u32 %s387_s3, 4  ;;  %s26_s28 = sshll.u32 %s277_s27, 4  ;;  %s25_s26 = int_to_ptr.hbm [resolvable:$true] %s24_s26  ;;  %s27_s28 = int_to_ptr.vmem [resolvable:$true] %s26_s28 }
   0x2   :  { %s279_s30 = smov 4  }
   0x3   :  { %32 = dma.hbm_to_vmem [thread:$0]  %s25_s26, 256, %s27_s28, [#allocation3], %s278_s29, %s278_s29, %s279_s30  }
   0x4   :  { %275 = dma.done.wait [#allocation3], 256  }
   0x5   :  { %276 = vsyncadd [#allocation3], 4294967040  ;;  %vm44_vm0 = vcmask 261120   ;;  %v40_v0 = vld [vmem:[%s384_s0] sm:$0xff]  ;;  %v41_v2 = vld [vmem:[%s384_s0 + $0x8] sm:$0xff]  ;;  %v280_v4 = vmov 32.0  }
   0x6   :  { %v45_v1 = vsel %vm44_vm0, %v40_v0, 0.0  ;;  %v48_v3 = vsel %vm44_vm0, %v41_v2, 0.0  ;;  %239 = vrcp.f32 %v280_v4  ;;  %v281_v21 = vmov 31.0   ;;  %v229_v28 = vld [vmem:[#allocation2 + $0x8] sm:$0xff]  ;;  %v228_v30 = vld [vmem:[#allocation2] sm:$0xff] }
   0x7   :  { %46 = vadd.xlane.f32.xlu0 %v45_v1  ;;  %241 = vrcp.f32 %v281_v21  ;;  %175 = vmatpush.bf16.msra.mxu0 %v229_v28  ;;  %v236_v1 = vld [vmem:[%s385_s1] ss:$0 sm:$0xff]  ;;  %vm185_vm15 = vcmask 257024  }
   0xb   :  { %176 = vmatpush.bf16.msra.mxu0 %v228_v30 }
   0xc   :  { %v240_v5 = vpop.eup %239 }
   0xd   :  { %v52_v6 = vmul.f32 32.0, %v240_v5  ;;  %vm56_vm1 = vweird.f32 %v240_v5  ;;  %v242_v22 = vpop.eup %241 }
   0xe   :  { %v71_v23 = vmul.f32 31.0, %v242_v22  ;;  %vm75_vm2 = vweird.f32 %v242_v22 }
   0xf   :  { %49 = vadd.xlane.f32.xlu0 %v48_v3  ;;  %v53_v7 = vsub.f32 1.0, %v52_v6 }
  0x10   :  { %v72_v24 = vsub.f32 1.0, %v71_v23 }
  0x11   :  { %v54_v8 = vmul.f32 %v240_v5, %v53_v7 }
  0x12   :  { %v73_v25 = vmul.f32 %v242_v22, %v72_v24 }
  0x13   :  { %v55_v9 = vadd.f32 %v240_v5, %v54_v8 }
  0x14   :  { %v74_v26 = vadd.f32 %v242_v22, %v73_v25 }
  0x15   :  { %v57_v10 = vsel %vm56_vm1, %v240_v5, %v55_v9 }
  0x16   :  { %v76_v27 = vsel %vm75_vm2, %v242_v22, %v74_v26 }
  0x7a   :  { %v47_v11 = vpop.xlane.xlu0 %46 }
  0x7b   :  { %v58_v12 = vmul.f32 %v57_v10, %v47_v11 }
  0x7d   :  { %v336_v13 = vsub.f32 %v40_v0, %v58_v12 }
  0x7f   :  { %v62_v14 = vmul.f32 %v336_v13, %v336_v13  ;;  %v82_v9 = vmul.f32 %v236_v1, %v336_v13  ;;  %v238_v13 = vld [vmem:[%s388_s4] ss:$0 sm:$0xff] }
  0x81   :  { %v64_v15 = vsel %vm44_vm0, %v62_v14, 0.0 }
  0x82   :  { %65 = vadd.xlane.f32.xlu1 %v64_v15  ;;  %v50_v16 = vpop.xlane.xlu0 %49 }
  0x83   :  { %v59_v17 = vmul.f32 %v57_v10, %v50_v16  ;;  %v237_v16 = vld [vmem:[%s386_s2] ss:$0 sm:$0xff]  ;;  %s282_s2 = smov 96  }
  0x85   :  { %v341_v18 = vsub.f32 %v41_v2, %v59_v17 }
  0x87   :  { %v63_v19 = vmul.f32 %v341_v18, %v341_v18  ;;  %v83_v12 = vmul.f32 %v236_v1, %v341_v18 }
  0x89   :  { %v67_v20 = vsel %vm44_vm0, %v63_v19, 0.0 }
  0x8a   :  { %68 = vadd.xlane.f32.xlu1 %v67_v20 }
  0xf5   :  { %v66_v29 = vpop.xlane.xlu1 %65 }
  0xf6   :  { %v77_v31 = vmul.f32 %v76_v27, %v66_v29 }
  0xf8   :  { %243 = vrsqrt.f32 %v77_v31  ;;  %vm91_vm3 = vcmp.eq.f32.partialorder %v77_v31, inf  ;;  %v94_v44 = vand.u32 2147483648, %v77_v31  ;;  %vm93_vm4 = vcmp.eq.f32.partialorder %v77_v31, 0.0 }
  0xfd   :  { %v69_v32 = vpop.xlane.xlu1 %68 }
  0xfe   :  { %v244_v33 = vpop.eup %243  ;;  %v78_v34 = vmul.f32 %v76_v27, %v69_v32 }
  0xff   :  { %v85_v35 = vmul.f32 %v244_v33, %v77_v31 }
 0x100   :  { %245 = vrsqrt.f32 %v78_v34  ;;  %vm103_vm5 = vcmp.eq.f32.partialorder %v78_v34, inf  ;;  %v106_v52 = vand.u32 2147483648, %v78_v34  ;;  %vm105_vm6 = vcmp.eq.f32.partialorder %v78_v34, 0.0 }
 0x101   :  { %v86_v36 = vmul.f32 %v244_v33, %v85_v35 }
 0x103   :  { %v87_v37 = vmul.f32 0.5, %v86_v36 }
 0x105   :  { %v88_v38 = vsub.f32 1.5, %v87_v37 }
 0x106   :  { %v246_v39 = vpop.eup %245 }
 0x107   :  { %v89_v40 = vmul.f32 %v244_v33, %v88_v38  ;;  %v97_v41 = vmul.f32 %v246_v39, %v78_v34 }
 0x109   :  { %v90_v42 = vmul.f32 %v89_v40, %v77_v31  ;;  %v98_v43 = vmul.f32 %v246_v39, %v97_v41 }
 0x10b   :  { %v92_v45 = vsel %vm91_vm3, %v77_v31, %v90_v42  ;;  %v99_v46 = vmul.f32 0.5, %v98_v43 }
 0x10c   :  { %v95_v47 = vsel %vm93_vm4, %v94_v44, %v92_v45 }
 0x10d   :  { %v100_v48 = vsub.f32 1.5, %v99_v46  ;;  %v108_v49 = vadd.f32 1e-06, %v95_v47 }
 0x10f   :  { %v101_v50 = vmul.f32 %v246_v39, %v100_v48  ;;  %247 = vrcp.f32 %v108_v49  ;;  %v121_v62 = vand.u32 2147483648, %v108_v49  ;;  %vm115_vm8 = vweird.f32 %v108_v49 }
 0x110   :  { %v119_v63 = vand.u32 2147483647, %v108_v49 }
 0x111   :  { %v102_v51 = vmul.f32 %v101_v50, %v78_v34  ;;  %v122_v4 = vor.u32 1.1754944e-38, %v121_v62 }
 0x112   :  { %vm120_vm10 = vcmp.eq.f32.partialorder %v119_v63, 8.507059e+37 }
 0x113   :  { %v104_v53 = vsel %vm103_vm5, %v78_v34, %v102_v51 }
 0x114   :  { %v107_v54 = vsel %vm105_vm6, %v106_v52, %v104_v53 }
 0x115   :  { %v248_v55 = vpop.eup %247  ;;  %v109_v56 = vadd.f32 1e-06, %v107_v54 }
 0x116   :  { %v111_v57 = vmul.f32 %v248_v55, %v108_v49  ;;  %vm116_vm7 = vweird.f32 %v248_v55 }
 0x117   :  { %249 = vrcp.f32 %v109_v56  ;;  %vm117_vm9 = vmor %vm115_vm8, %vm116_vm7  ;;  %v136_v5 = vand.u32 2147483648, %v109_v56  ;;  %v134_v7 = vand.u32 2147483647, %v109_v56  ;;  %vm130_vm12 = vweird.f32 %v109_v56 }
 0x118   :  { %v112_v58 = vsub.f32 1.0, %v111_v57 }
 0x119   :  { %v137_v11 = vor.u32 1.1754944e-38, %v136_v5  ;;  %vm135_vm14 = vcmp.eq.f32.partialorder %v134_v7, 8.507059e+37 }
 0x11a   :  { %v113_v59 = vmul.f32 %v248_v55, %v112_v58 }
 0x11c   :  { %v114_v60 = vadd.f32 %v248_v55, %v113_v59 }
 0x11d   :  { %v250_v61 = vpop.eup %249 }
 0x11e   :  { %v126_v0 = vmul.f32 %v250_v61, %v109_v56  ;;  %v118_v2 = vsel %vm117_vm9, %v248_v55, %v114_v60  ;;  %vm131_vm11 = vweird.f32 %v250_v61 }
 0x11f   :  { %v123_v8 = vsel %vm120_vm10, %v122_v4, %v118_v2  ;;  %vm132_vm13 = vmor %vm130_vm12, %vm131_vm11 }
 0x120   :  { %v127_v3 = vsub.f32 1.0, %v126_v0  ;;  %v124_v14 = vmul.f32 %v123_v8, %v82_v9 }
 0x122   :  { %v128_v6 = vmul.f32 %v250_v61, %v127_v3  ;;  %v143_v20 = vadd.f32 %v237_v16, %v124_v14 }
 0x124   :  { %v129_v10 = vadd.f32 %v250_v61, %v128_v6 }
 0x126   :  { %v133_v15 = vsel %vm132_vm13, %v250_v61, %v129_v10 }
 0x127   :  { %v138_v17 = vsel %vm135_vm14, %v137_v11, %v133_v15 }
 0x128   :  { %v139_v19 = vmul.f32 %v138_v17, %v83_v12 }
 0x12a   :  { %v144_v21 = vadd.f32 %v237_v16, %v139_v19 }
 0x12c   :  { %v145_v22 = vpack.c.bf16 %v144_v21, %v143_v20 }
 0x12e   :  { %227 = vmatmul.msk.bf16.vlgmr.msra.gmra.mxu0 %vm44_vm0, %v145_v22 }
 0x1ab   :  { %v178_v23 = vpop.f32.mrf.mxu0 }
 0x1ac   :  { %v179_v18 = vadd.f32 %v238_v13, %v178_v23 }
 0x1ae   :  { %v183_v24 = vpack.c.bf16 %v179_v18, %v179_v18 }
 0x1b0   :  { %186 = vst.msk [vmem:[%s389_s5] sm:$0xf] %vm185_vm15, %v183_v24  ;;  %198 = vrot.lane.b32.xlu0 %v183_v24, %s278_s29  ;;  %190 = vrot.lane.b32.xlu2 %v183_v24, %s282_s2 }
 0x1b3   :  { %v180_v25 = vpop.f32.mrf.mxu0 }
 0x1b4   :  { %v181_v26 = vadd.f32 %v238_v13, %v180_v25 }
 0x1b6   :  { %v184_v27 = vpack.c.bf16 %v181_v26, %v181_v26 }
 0x1b8   :  { %187 = vst.msk [vmem:[%s389_s5 + $0x4] sm:$0xf] %vm185_vm15, %v184_v27  ;;  %200 = vrot.lane.b32.xlu1 %v184_v27, %s278_s29  ;;  %192 = vrot.lane.b32.xlu2 %v184_v27, %s282_s2 }
 0x20a   :  { %v191_v28 = vpop.permute.xlu2 %190 }
 0x20b   :  { %196 = vst.msk [vmem:[%s390_s6] sm:$0xf] %vm185_vm15, %v191_v28 }
 0x212   :  { %v193_v29 = vpop.permute.xlu2 %192 }
 0x213   :  { %197 = vst.msk [vmem:[%s390_s6 + $0x4] sm:$0xf] %vm185_vm15, %v193_v29 }
 0x222   :  { %v199_v30 = vpop.permute.xlu0 %198 }
 0x223   :  { %204 = vst.msk [vmem:[%s391_s7] sm:$0xf] %vm185_vm15, %v199_v30 }
 0x22a   :  { %v201_v31 = vpop.permute.xlu1 %200 }
 0x22b   :  { %205 = vst.msk [vmem:[%s391_s7 + $0x4] sm:$0xf] %vm185_vm15, %v201_v31 }
 0x22c   :  { %218 = vsyncpa [#allocation3], 1 }

// kernel: encoder_fwd.9
= control target key start
LH: loop header
LB: loop body
LE: loop exit
PB: predicated region body
PF: predicated region fallthrough
CT: control target
= control target key end

     0   :  { %vm19_vm0 = vcmask 261120   ;;  %s241_s0 = inlined_call_operand.vmem [shape: f32[16,32], index: 0, kind: input, shape index: {}]   ;;  %s242_s1 = inlined_call_operand.vmem [shape: f32[1,32], index: 1, kind: input, shape index: {}]   ;;  %s243_s2 = inlined_call_operand.vmem [shape: f32[1,32], index: 2, kind: input, shape index: {}]   ;;  %s244_s3 = inlined_call_operand.hbm [shape: f32[16,32], index: 3, kind: output, shape index: {}]  }
   0x1   :  { %v15_v0 = vld [vmem:[%s241_s0] sm:$0xff] }
   0x2   :  { %v20_v1 = vsel %vm19_vm0, %v15_v0, 0.0 }
   0x3   :  { %8 = vsyncpa [#allocation3], 0  ;;  %21 = vadd.xlane.f32.xlu0 %v20_v1  ;;  %v16_v2 = vld [vmem:[%s241_s0 + $0x8] sm:$0xff]  ;;  %v185_v4 = vmov 32.0   ;;  %v186_v21 = vmov 31.0   ;;  %s128_s21 = sshll.u32 %s244_s3, 4  ;;  %s129_s21 = int_to_ptr.hbm [resolvable:$true] %s128_s21 }
   0x4   :  { %v23_v3 = vsel %vm19_vm0, %v16_v2, 0.0  ;;  %147 = vrcp.f32 %v185_v4  ;;  %v145_v58 = vld [vmem:[%s242_s1] ss:$0 sm:$0xff]  ;;  %s187_s1 = smov [#allocation2]   ;;  %s188_s22 = smov 128  }
   0x5   :  { %149 = vrcp.f32 %v186_v21  ;;  %s189_s23 = smov 8  }
   0xa   :  { %v148_v5 = vpop.eup %147 }
   0xb   :  { %24 = vadd.xlane.f32.xlu0 %v23_v3  ;;  %v27_v6 = vmul.f32 32.0, %v148_v5  ;;  %vm31_vm1 = vweird.f32 %v148_v5  ;;  %v150_v22 = vpop.eup %149  ;;  %v146_v3 = vld [vmem:[%s243_s2] ss:$0 sm:$0xff]  ;;  %s126_s2 = sshll.u32 %s187_s1, 4  ;;  %s127_s2 = int_to_ptr.vmem [resolvable:$true] %s126_s2 }
   0xc   :  { %v46_v23 = vmul.f32 31.0, %v150_v22  ;;  %vm50_vm2 = vweird.f32 %v150_v22 }
   0xd   :  { %v28_v7 = vsub.f32 1.0, %v27_v6 }
   0xe   :  { %v47_v24 = vsub.f32 1.0, %v46_v23 }
   0xf   :  { %v29_v8 = vmul.f32 %v148_v5, %v28_v7 }
  0x10   :  { %v48_v25 = vmul.f32 %v150_v22, %v47_v24 }
  0x11   :  { %v30_v9 = vadd.f32 %v148_v5, %v29_v8 }
  0x12   :  { %v49_v26 = vadd.f32 %v150_v22, %v48_v25 }
  0x13   :  { %v32_v10 = vsel %vm31_vm1, %v148_v5, %v30_v9 }
  0x14   :  { %v51_v27 = vsel %vm50_vm2, %v150_v22, %v49_v26 }
  0x76   :  { %v22_v11 = vpop.xlane.xlu0 %21 }
  0x77   :  { %v33_v12 = vmul.f32 %v32_v10, %v22_v11 }
  0x79   :  { %v218_v13 = vsub.f32 %v15_v0, %v33_v12 }
  0x7b   :  { %v37_v14 = vmul.f32 %v218_v13, %v218_v13  ;;  %v57_v0 = vmul.f32 %v145_v58, %v218_v13 }
  0x7d   :  { %v39_v15 = vsel %vm19_vm0, %v37_v14, 0.0 }
  0x7e   :  { %40 = vadd.xlane.f32.xlu1 %v39_v15  ;;  %v25_v16 = vpop.xlane.xlu0 %24 }
  0x7f   :  { %v34_v17 = vmul.f32 %v32_v10, %v25_v16 }
  0x81   :  { %v223_v18 = vsub.f32 %v16_v2, %v34_v17 }
  0x83   :  { %v38_v19 = vmul.f32 %v223_v18, %v223_v18  ;;  %v58_v13 = vmul.f32 %v145_v58, %v223_v18 }
  0x85   :  { %v42_v20 = vsel %vm19_vm0, %v38_v19, 0.0 }
  0x86   :  { %43 = vadd.xlane.f32.xlu1 %v42_v20 }
  0xf1   :  { %v41_v28 = vpop.xlane.xlu1 %40 }
  0xf2   :  { %v52_v29 = vmul.f32 %v51_v27, %v41_v28 }
  0xf4   :  { %151 = vrsqrt.f32 %v52_v29  ;;  %vm66_vm3 = vcmp.eq.f32.partialorder %v52_v29, inf  ;;  %v69_v42 = vand.u32 2147483648, %v52_v29  ;;  %vm68_vm4 = vcmp.eq.f32.partialorder %v52_v29, 0.0 }
  0xf9   :  { %v44_v30 = vpop.xlane.xlu1 %43 }
  0xfa   :  { %v152_v31 = vpop.eup %151  ;;  %v53_v32 = vmul.f32 %v51_v27, %v44_v30 }
  0xfb   :  { %v60_v33 = vmul.f32 %v152_v31, %v52_v29 }
  0xfc   :  { %153 = vrsqrt.f32 %v53_v32  ;;  %vm78_vm5 = vcmp.eq.f32.partialorder %v53_v32, inf  ;;  %v81_v50 = vand.u32 2147483648, %v53_v32  ;;  %vm80_vm6 = vcmp.eq.f32.partialorder %v53_v32, 0.0 }
  0xfd   :  { %v61_v34 = vmul.f32 %v152_v31, %v60_v33 }
  0xff   :  { %v62_v35 = vmul.f32 0.5, %v61_v34 }
 0x101   :  { %v63_v36 = vsub.f32 1.5, %v62_v35 }
 0x102   :  { %v154_v37 = vpop.eup %153 }
 0x103   :  { %v64_v38 = vmul.f32 %v152_v31, %v63_v36  ;;  %v72_v39 = vmul.f32 %v154_v37, %v53_v32 }
 0x105   :  { %v65_v40 = vmul.f32 %v64_v38, %v52_v29  ;;  %v73_v41 = vmul.f32 %v154_v37, %v72_v39 }
 0x107   :  { %v67_v43 = vsel %vm66_vm3, %v52_v29, %v65_v40  ;;  %v74_v44 = vmul.f32 0.5, %v73_v41 }
 0x108   :  { %v70_v45 = vsel %vm68_vm4, %v69_v42, %v67_v43 }
 0x109   :  { %v83_v46 = vadd.f32 1e-06, %v70_v45  ;;  %v75_v47 = vsub.f32 1.5, %v74_v44 }
 0x10b   :  { %155 = vrcp.f32 %v83_v46  ;;  %v76_v48 = vmul.f32 %v154_v37, %v75_v47  ;;  %v96_v57 = vand.u32 2147483648, %v83_v46  ;;  %v94_v60 = vand.u32 2147483647, %v83_v46 }
 0x10c   :  { %vm90_vm8 = vweird.f32 %v83_v46 }
 0x10d   :  { %v77_v49 = vmul.f32 %v76_v48, %v53_v32  ;;  %v97_v63 = vor.u32 1.1754944e-38, %v96_v57  ;;  %vm95_vm10 = vcmp.eq.f32.partialorder %v94_v60, 8.507059e+37 }
 0x10f   :  { %v79_v51 = vsel %vm78_vm5, %v53_v32, %v77_v49 }
 0x110   :  { %v82_v52 = vsel %vm80_vm6, %v81_v50, %v79_v51 }
 0x111   :  { %v156_v53 = vpop.eup %155  ;;  %v84_v54 = vadd.f32 1e-06, %v82_v52 }
 0x112   :  { %v86_v55 = vmul.f32 %v156_v53, %v83_v46  ;;  %vm91_vm7 = vweird.f32 %v156_v53 }
 0x113   :  { %157 = vrcp.f32 %v84_v54  ;;  %vm92_vm9 = vmor %vm90_vm8, %vm91_vm7  ;;  %v111_v7 = vand.u32 2147483648, %v84_v54  ;;  %v109_v9 = vand.u32 2147483647, %v84_v54  ;;  %vm105_vm12 = vweird.f32 %v84_v54 }
 0x114   :  { %v87_v56 = vsub.f32 1.0, %v86_v55 }
 0x115   :  { %v112_v12 = vor.u32 1.1754944e-38, %v111_v7  ;;  %vm110_vm14 = vcmp.eq.f32.partialorder %v109_v9, 8.507059e+37 }
 0x116   :  { %v88_v59 = vmul.f32 %v156_v53, %v87_v56 }
 0x118   :  { %v89_v61 = vadd.f32 %v156_v53, %v88_v59 }
 0x119   :  { %v158_v62 = vpop.eup %157 }
 0x11a   :  { %v93_v1 = vsel %vm92_vm9, %v156_v53, %v89_v61  ;;  %v101_v2 = vmul.f32 %v158_v62, %v84_v54  ;;  %vm106_vm11 = vweird.f32 %v158_v62 }
 0x11b   :  { %v98_v4 = vsel %vm95_vm10, %v97_v63, %v93_v1  ;;  %vm107_vm13 = vmor %vm105_vm12, %vm106_vm11 }
 0x11c   :  { %v99_v5 = vmul.f32 %v98_v4, %v57_v0  ;;  %v102_v6 = vsub.f32 1.0, %v101_v2 }
 0x11e   :  { %v103_v8 = vmul.f32 %v158_v62, %v102_v6  ;;  %v118_v10 = vadd.f32 %v146_v3, %v99_v5 }
 0x120   :  { %v104_v11 = vadd.f32 %v158_v62, %v103_v8  ;;  %120 = vst.msk [vmem:[#allocation2] sm:$0xff] %vm19_vm0, %v118_v10 }
 0x122   :  { %v108_v14 = vsel %vm107_vm13, %v158_v62, %v104_v11 }
 0x123   :  { %v113_v15 = vsel %vm110_vm14, %v112_v12, %v108_v14 }
 0x124   :  { %v114_v16 = vmul.f32 %v113_v15, %v58_v13 }
 0x126   :  { %v119_v17 = vadd.f32 %v146_v3, %v114_v16 }
 0x128   :  { %121 = vst.msk [vmem:[#allocation2 + $0x8] sm:$0xff] %vm19_vm0, %v119_v17 }
 0x129   :  { %134 = dma.vmem_to_hbm [thread:$0]  %s127_s2, 256, %s129_s21, [#allocation3], %s188_s22, %s188_s22, %s189_s23  }
 0x12a   :  { %183 = dma.done.wait [#allocation3], 256  }
 0x12b   :  { %184 = vsyncadd [#allocation3], 4294967040 }
 0x12c   :  { %139 = vsyncpa [#allocation3], 1 }

// kernel: encoder_fwd.6
= control target key start
LH: loop header
LB: loop body
LE: loop exit
PB: predicated region body
PF: predicated region fallthrough
CT: control target
= control target key end

     0   :  { %s1348_s25 = smov 0   ;;  %s1350_s26 = smov 0   ;;  %s1493_s0 = inlined_call_operand.vmem [shape: bf16[2,8,32], index: 0, kind: input, shape index: {}]   ;;  %s1494_s1 = inlined_call_operand.vmem [shape: bf16[2,8,32], index: 1, kind: input, shape index: {}]   ;;  %s1495_s2 = inlined_call_operand.vmem [shape: bf16[2,8,32], index: 2, kind: input, shape index: {}]   ;;  %s1496_s3 = inlined_call_operand.vmem [shape: f32[2,1,8], index: 3, kind: input, shape index: {}]   ;;  %s1497_s4 = inlined_call_operand.vmem [shape: f32[2,8,32], index: 4, kind: input, shape index: {}]   ;;  %s1498_s5 = inlined_call_operand.vmem [shape: bf16[32,32], index: 5, kind: input, shape index: {}]   ;;  %s1499_s6 = inlined_call_operand.vmem [shape: f32[1,32], index: 6, kind: input, shape index: {}]   ;;  %s1500_s7 = inlined_call_operand.vmem [shape: f32[1,32], index: 7, kind: input, shape index: {}]   ;;  %s1501_s8 = inlined_call_operand.vmem [shape: f32[1,32], index: 8, kind: input, shape index: {}]   ;;  %s1502_s9 = inlined_call_operand.vmem [shape: bf16[32,64], index: 9, kind: input, shape index: {}]   ;;  %s1503_s10 = inlined_call_operand.vmem [shape: f32[1,64], index: 10, kind: input, shape index: {}]   ;;  %s1504_s11 = inlined_call_operand.vmem [shape: bf16[64,32], index: 11, kind: input, shape index: {}]   ;;  %s1505_s12 = inlined_call_operand.vmem [shape: f32[1,32], index: 12, kind: input, shape index: {}]   ;;  %s1506_s13 = inlined_call_operand.vmem [shape: f32[2,8,32], index: 13, kind: output, shape index: {}]  }
   0x1   :  { %s1352_s27 = smov 0  }
   0x2 LB: > { %s35_s28 = sadd.s32 1, %s1263_s26  ;;  %p1124_p0 = scmp.ge.s32.totalorder %s1267_s27, 1  ;;  %s1267_s27 = sphi %s1352_s27, %s23_s27   ;;  %s1263_s26 = sphi %s1350_s26, %s1508_s26   ;;  %s1259_s25 = sphi %s1348_s25, %s1507_s25  }
   0x3   : > { %p37_p1 = scmp.ge.s32.totalorder %s35_s28, 2  ;;  %p445_p2 = scmp.lt.s32.totalorder %s1267_s27, 3 }
   0x5   : > { %s1510_s28 = smov (%p37_p1, %s35_s28), 0  ;;  %p446_p3 = pnand %p1124_p0, %p445_p2 }
   0x6   : > { %p511_p4 = scmp.lt.s32.totalorder (!%p446_p3), %s1259_s25, 1  ;;  %s1269_s19 = smov (!%p446_p3), 112  }
   0x7   : > { %449 = sbr.rel (%p446_p3) target bundleno = 1771 (0x6eb), region = 72  ;;  %s1270_s20 = smov (!%p446_p3), 104  }
   0x8   : > { %s1272_s24 = smov (!%p446_p3), 120   ;;  %s1274_s16 = smov (!%p446_p3), 16  }
   0x9   : > { %s1275_s17 = smov (!%p446_p3), 24  }
   0xc   : > { %s1512_s25 = smov (!%p511_p4, %s1259_s25), 1  ;;  %vm556_vm0 = vcmask 64512   ;;  %v1271_v11 = vmov 0.0   ;;  %vm591_vm2 = vcmask 1043456   ;;  %vm798_vm3 = vcmask 130048  }
   0xd   : > { %s1369_s29 = sshll.u32 %s1512_s25, 2  ;;  %s528_s23 = scalar_lea.vmem %s1496_s3, %s1512_s25  ;;  %vm800_vm4 = vcmask 195584   ;;  %vm823_vm5 = vcmask 261120   ;;  %vm979_vm14 = vcmask 523264  }
   0xe   : > { %s521_s15 = scalar_lea.vmem %s1494_s1, %s1369_s29  ;;  %s517_s18 = scalar_lea.vmem %s1493_s0, %s1369_s29  ;;  %v544_v10 = vld [vmem:[%s528_s23] sm:$0x1] }
   0xf   : > { %v551_v0 = vld [vmem:[%s521_s15] sm:$0xf]  ;;  %vm545_vm1 = vcmp.eq.f32.partialorder %v544_v10, 0.0  ;;  %s525_s15 = scalar_lea.vmem %s1495_s2, %s1369_s29  ;;  %s1273_s29 = smov 8  }
  0x10   : > { %v547_v1 = vld [vmem:[%s517_s18] sm:$0xf]  ;;  %v561_v2 = vsel %vm556_vm0, %v551_v0, 0  ;;  %v614_v6 = vunpack.c.l.b16 %v551_v0  ;;  %v546_v12 = vsel %vm545_vm1, -1e+09, %v1271_v11  ;;  %s1128_s22 = sshll.u32 %s1512_s25, 3 }
  0x11   : > { %v548_v3 = vunpack.c.l.bf16 %v547_v1  ;;  %570 = vmatpush.bf16.xpose.msra.mxu0 %v561_v2  ;;  %v554_v13 = vperm.slane %v546_v12, 0  ;;  %v552_v28 = vld [vmem:[%s525_s15] sm:$0xf]  ;;  %s535_s30 = scalar_lea.vmem %s1497_s4, %s1128_s22  ;;  %s542_s14 = scalar_lea.vmem %s1506_s13, %s1128_s22 }
  0x12   : > { %v615_v7 = vpack.c.b16 %v614_v6, %v614_v6  ;;  %v593_v29 = vsel %vm591_vm2, %v552_v28, 0  ;;  %v650_v52 = vunpack.c.l.b16 %v552_v28 }
  0x13   : > { %v549_v4 = vmul.f32 0.35355338, %v548_v3  ;;  %602 = vmatpush.bf16.msra.mxu1 %v593_v29  ;;  %v1176_v29 = vld [vmem:[%s1498_s5 + $0x8] sm:$0xff] }
  0x14   : > { %675 = vrot.lane.b32.xlu2 %v615_v7, %s1269_s19  ;;  %v651_v53 = vpack.c.b16 %v650_v52, %v650_v52 }
  0x15   : > { %v550_v5 = vpack.c.bf16 %v549_v4, %v549_v4 }
  0x17   : > { %v609_v8 = vunpack.c.l.b16 %v550_v5 }
  0x18   : > { %1130 = vmatmul.msk.bf16.vlgmr.msra.gmra.mxu0 %vm556_vm0, %v550_v5 }
  0x19   : > { %v610_v9 = vpack.c.b16 %v609_v8, %v609_v8 }
  0x1c   : > { %731 = vrot.lane.b32.xlu2 %v615_v7, %s1270_s20 }
  0x24   : > { %673 = vrot.lane.b32.xlu2 %v610_v9, %s1269_s19 }
  0x2c   : > { %729 = vrot.lane.b32.xlu2 %v610_v9, %s1270_s20 }
  0x6e   : > { %v676_v18 = vpop.permute.xlu2 %675 }
  0x6f   : > { %v681_v30 = vsel %vm556_vm0, %v676_v18, 0 }
  0x70   : > { %690 = vmatpush.bf16.xpose.msrb.mxu1 %v681_v30  ;;  %v1175_v30 = vld [vmem:[%s1498_s5] sm:$0xff] }
  0x76   : > { %v732_v19 = vpop.permute.xlu2 %731 }
  0x77   : > { %v737_v24 = vsel %vm556_vm0, %v732_v19, 0 }
  0x78   : > { %746 = vmatpush.bf16.xpose.msrb.mxu0 %v737_v24 }
  0x7e   : > { %v674_v23 = vpop.permute.xlu2 %673 }
  0x86   : > { %v730_v27 = vpop.permute.xlu2 %729 }
  0x87   : > { %1136 = vmatmul.msk.bf16.vlgmr.msrb.gmra.mxu0 %vm556_vm0, %v730_v27 }
  0x95   : > { %v572_v14 = vpop.f32.mrf.mxu0 }
  0x96   : > { %v573_v15 = vadd.f32 %v572_v14, %v554_v13 }
  0x98   : > { %v576_v16 = vsel %vm556_vm0, %v573_v15, -inf }
  0x99   : > { %577 = vmax.xlane.f32.xlu0 %v576_v16 }
  0x9d   : > { %v574_v17 = vpop.f32.mrf.mxu0 }
  0xad   : > { %616 = vrot.lane.b32.xlu0 %v615_v7, %s1272_s24 }
 0x104   : > { %v748_v37 = vpop.f32.mrf.mxu0 }
 0x105   : > { %v749_v38 = vadd.f32 %v748_v37, %v554_v13 }
 0x107   : > { %v752_v39 = vsel %vm556_vm0, %v749_v38, -inf }
 0x10c   : > { %v578_v20 = vpop.xlane.xlu0 %577  ;;  %v750_v40 = vpop.f32.mrf.mxu0 }
 0x10d   : > { %v579_v21 = vsub.f32 %v573_v15, %v578_v20  ;;  %v840_v40 = vld [vmem:[%s535_s30] sm:$0xff] }
 0x10f   : > { %v580_v22 = vmul.f32 1.442695, %v579_v21 }
 0x111   : > { %1221 = vpow2.f32 %v580_v22 }
 0x117   : > { %v1222_v25 = vpop.eup %1221 }
 0x118   : > { %v582_v26 = vsel %vm556_vm0, %v1222_v25, 0.0 }
 0x119   : > { %583 = vadd.xlane.f32.xlu1 %v582_v26 }
 0x11f   : > { %v617_v31 = vpop.permute.xlu0 %616 }
 0x120   : > { %v622_v32 = vsel %vm556_vm0, %v617_v31, 0 }
 0x121   : > { %631 = vmatpush.bf16.xpose.msra.mxu2 %v622_v32 }
 0x132   : > { %611 = vrot.lane.b32.xlu1 %v610_v9, %s1272_s24 }
 0x15c   : > { %753 = vmax.xlane.f32.xlu1 %v752_v39 }
 0x18c   : > { %v584_v33 = vpop.xlane.xlu1 %583 }
 0x18d   : > { %1223 = vrcp.f32 %v584_v33 }
 0x193   : > { %v1224_v34 = vpop.eup %1223 }
 0x194   : > { %v586_v35 = vmul.f32 %v1224_v34, %v1222_v25 }
 0x196   : > { %v587_v36 = vpack.c.bf16 %v586_v35, %v586_v35 }
 0x198   : > { %1131 = vmatmul.msk.bf16.vlgmr.msra.gmra.mxu1 %vm556_vm0, %v587_v36 }
 0x199   : > { %833 = vmatpush.bf16.msra.mxu1 %v1176_v29 }
 0x19d   : > { %834 = vmatpush.bf16.msra.mxu1 %v1175_v30 }
 0x1a4   : > { %v612_v41 = vpop.permute.xlu1 %611 }
 0x1a5   : > { %1132 = vmatmul.msk.bf16.vlgmr.msra.gmra.mxu2 %vm556_vm0, %v612_v41 }
 0x1a8   : > { %1134 = vmatmul.msk.bf16.vlgmr.msrb.gmra.mxu1 %vm556_vm0, %v674_v23 }
 0x1cf   : > { %v754_v56 = vpop.xlane.xlu1 %753 }
 0x1d0   : > { %v755_v60 = vsub.f32 %v749_v38, %v754_v56  ;;  %v1216_v38 = vld [vmem:[%s1499_s6] ss:$0 sm:$0xff] }
 0x1d2   : > { %v756_v62 = vmul.f32 1.442695, %v755_v60 }
 0x215   : > { %v1406_v42 = vpop.f32.mrf.mxu1 }
 0x21d   : > { %v606_v43 = vpop.f32.mrf.mxu1 }
 0x225   : > { %v692_v44 = vpop.f32.mrf.mxu1 }
 0x226   : > { %v693_v45 = vadd.f32 %v692_v44, %v554_v13 }
 0x228   : > { %v633_v46 = vpop.f32.mrf.mxu2  ;;  %v696_v47 = vsel %vm556_vm0, %v693_v45, -inf }
 0x229   : > { %v634_v48 = vadd.f32 %v633_v46, %v554_v13  ;;  %697 = vmax.xlane.f32.xlu2 %v696_v47 }
 0x22b   : > { %v637_v49 = vsel %vm556_vm0, %v634_v48, -inf }
 0x22c   : > { %638 = vmax.xlane.f32.xlu0 %v637_v49 }
 0x22d   : > { %v694_v50 = vpop.f32.mrf.mxu1 }
 0x230   : > { %v635_v51 = vpop.f32.mrf.mxu2 }
 0x241   : > { %652 = vrot.lane.b32.xlu2 %v651_v53, %s1272_s24 }
 0x29c   : > { %v698_v54 = vpop.xlane.xlu2 %697 }
 0x29d   : > { %v699_v55 = vsub.f32 %v693_v45, %v698_v54  ;;  %v1276_v45 = vmov 32.0  }
 0x29f   : > { %v700_v57 = vmul.f32 1.442695, %v699_v55  ;;  %v639_v58 = vpop.xlane.xlu0 %638 }
 0x2a0   : > { %v640_v59 = vsub.f32 %v634_v48, %v639_v58 }
 0x2a1   : > { %1225 = vpow2.f32 %v700_v57  ;;  %v1277_v57 = vmov 31.0  }
 0x2a2   : > { %v641_v61 = vmul.f32 1.442695, %v640_v59 }
 0x2a4   : > { %1227 = vpow2.f32 %v641_v61  ;;  %v653_v5 = vpop.permute.xlu2 %652 }
 0x2a5   : > { %1229 = vpow2.f32 %v756_v62  ;;  %v658_v6 = vsel %vm591_vm2, %v653_v5, 0 }
 0x2a6   : > { %667 = vmatpush.bf16.msra.mxu3 %v658_v6 }
 0x2a7   : > { %v1226_v63 = vpop.eup %1225 }
 0x2a8   : > { %v702_v0 = vsel %vm556_vm0, %v1226_v63, 0.0 }
 0x2a9   : > { %703 = vadd.xlane.f32.xlu1 %v702_v0  ;;  %v1177_v0 = vld [vmem:[%s1502_s9] sm:$0xff] }
 0x2aa   : > { %v1228_v1 = vpop.eup %1227 }
 0x2ab   : > { %v643_v2 = vsel %vm556_vm0, %v1228_v1, 0.0  ;;  %v1230_v3 = vpop.eup %1229 }
 0x2ac   : > { %644 = vadd.xlane.f32.xlu0 %v643_v2  ;;  %v758_v4 = vsel %vm556_vm0, %v1230_v3, 0.0 }
 0x2b4   : > { %759 = vadd.xlane.f32.xlu0 %v758_v4 }
 0x2c2   : > { %708 = vrot.lane.b32.xlu1 %v651_v53, %s1269_s19 }
 0x2c8   : > { %764 = vrot.lane.b32.xlu0 %v651_v53, %s1270_s20 }
 0x31c   : > { %v704_v10 = vpop.xlane.xlu1 %703 }
 0x31f   : > { %v645_v7 = vpop.xlane.xlu0 %644 }
 0x320   : > { %1231 = vrcp.f32 %v645_v7 }
 0x321   : > { %1233 = vrcp.f32 %v704_v10 }
 0x326   : > { %v1232_v8 = vpop.eup %1231 }
 0x327   : > { %v647_v9 = vmul.f32 %v1232_v8, %v1228_v1  ;;  %v760_v12 = vpop.xlane.xlu0 %759  ;;  %v1234_v13 = vpop.eup %1233 }
 0x328   : > { %1235 = vrcp.f32 %v760_v12  ;;  %v706_v15 = vmul.f32 %v1234_v13, %v1226_v63  ;;  %v1178_v63 = vld [vmem:[%s1502_s9 + $0x8] sm:$0xff] }
 0x329   : > { %v648_v11 = vpack.c.bf16 %v647_v9, %v647_v9  ;;  %1237 = vrcp.f32 %v1276_v45  ;;  %v1182_v9 = vld [vmem:[%s1504_s11 + $0x18] sm:$0xff] }
 0x32a   : > { %v707_v19 = vpack.c.bf16 %v706_v15, %v706_v15  ;;  %1239 = vrcp.f32 %v1277_v57  ;;  %987 = vmatpush.bf16.msra.mxu0 %v1182_v9 }
 0x32b   : > { %1133 = vmatmul.msk.bf16.vlgmr.msra.gmra.mxu3 %vm556_vm0, %v648_v11  ;;  %v1181_v11 = vld [vmem:[%s1504_s11 + $0x10] sm:$0xff] }
 0x32e   : > { %v1236_v17 = vpop.eup %1235  ;;  %988 = vmatpush.bf16.msra.mxu0 %v1181_v11 }
 0x32f   : > { %v762_v18 = vmul.f32 %v1236_v17, %v1230_v3  ;;  %v1238_v46 = vpop.eup %1237 }
 0x330   : > { %v848_v47 = vmul.f32 32.0, %v1238_v46  ;;  %vm852_vm6 = vweird.f32 %v1238_v46  ;;  %v1240_v58 = vpop.eup %1239 }
 0x331   : > { %v763_v22 = vpack.c.bf16 %v762_v18, %v762_v18  ;;  %v861_v59 = vmul.f32 31.0, %v1240_v58  ;;  %vm865_vm7 = vweird.f32 %v1240_v58 }
 0x332   : > { %v849_v48 = vsub.f32 1.0, %v848_v47 }
 0x333   : > { %v862_v60 = vsub.f32 1.0, %v861_v59 }
 0x334   : > { %v709_v14 = vpop.permute.xlu1 %708  ;;  %v850_v49 = vmul.f32 %v1238_v46, %v849_v48 }
 0x335   : > { %v714_v16 = vsel %vm591_vm2, %v709_v14, 0  ;;  %v863_v61 = vmul.f32 %v1240_v58, %v862_v60 }
 0x336   : > { %723 = vmatpush.bf16.msrb.mxu3 %v714_v16  ;;  %v851_v50 = vadd.f32 %v1238_v46, %v850_v49 }
 0x337   : > { %v864_v62 = vadd.f32 %v1240_v58, %v863_v61 }
 0x338   : > { %v853_v51 = vsel %vm852_vm6, %v1238_v46, %v851_v50 }
 0x339   : > { %v866_v1 = vsel %vm865_vm7, %v1240_v58, %v864_v62 }
 0x33a   : > { %v765_v20 = vpop.permute.xlu0 %764  ;;  %934 = vmatpush.bf16.msra.mxu3 %v1178_v63 }
 0x33b   : > { %1135 = vmatmul.msk.bf16.vlgmr.msrb.gmra.mxu3 %vm556_vm0, %v707_v19  ;;  %v770_v21 = vsel %vm591_vm2, %v765_v20, 0 }
 0x33c   : > { %779 = vmatpush.bf16.msrb.mxu2 %v770_v21  ;;  %v1217_v21 = vld [vmem:[%s1500_s7] ss:$0 sm:$0xff] }
 0x33e   : > { %935 = vmatpush.bf16.msra.mxu3 %v1177_v0 }
 0x33f   : > { %1137 = vmatmul.msk.bf16.vlgmr.msrb.gmra.mxu2 %vm556_vm0, %v763_v22 }
 0x3ae   : > { %v669_v23 = vpop.f32.mrf.mxu3 }
 0x3af   : > { %786 = vrot.lane.b32.xlu2 %v669_v23, %s1273_s29 }
 0x3b6   : > { %v671_v24 = vpop.f32.mrf.mxu3 }
 0x3be   : > { %v725_v25 = vpop.f32.mrf.mxu3 }
 0x3bf   : > { %790 = vrot.lane.b32.xlu2 %v725_v25, %s1274_s16 }
 0x3c2   : > { %v781_v26 = vpop.f32.mrf.mxu2 }
 0x3c3   : > { %794 = vrot.lane.b32.xlu0 %v781_v26, %s1275_s17 }
 0x3c6   : > { %v727_v27 = vpop.f32.mrf.mxu3 }
 0x3ca   : > { %v783_v28 = vpop.f32.mrf.mxu2 }
 0x3cb   : > { %v1218_v28 = vld [vmem:[%s1501_s8] ss:$0 sm:$0xff] }
 0x409   : > { %v787_v31 = vpop.permute.xlu2 %786 }
 0x40a   : > { %v797_v33 = vsel %vm556_vm0, %v1406_v42, %v787_v31 }
 0x419   : > { %v791_v32 = vpop.permute.xlu2 %790 }
 0x41a   : > { %v799_v34 = vsel %vm798_vm3, %v797_v33, %v791_v32  ;;  %v1180_v33 = vld [vmem:[%s1504_s11 + $0x8] sm:$0xff] }
 0x41b   : > { %989 = vmatpush.bf16.msra.mxu0 %v1180_v33 }
 0x435   : > { %v795_v35 = vpop.permute.xlu0 %794 }
 0x436   : > { %v801_v36 = vsel %vm800_vm4, %v799_v34, %v795_v35  ;;  %v1179_v34 = vld [vmem:[%s1504_s11] sm:$0xff] }
 0x437   : > { %v802_v37 = vpack.c.bf16 %v801_v36, %v801_v36  ;;  %990 = vmatpush.bf16.msra.mxu0 %v1179_v34  ;;  %v1219_v35 = vld [vmem:[%s1503_s10] ss:$0 sm:$0xff] }
 0x439   : > { %1146 = vmatmul.msk.bf16.vlgmr.msra.gmra.mxu1 %vm823_vm5, %v802_v37 }
 0x4b6   : > { %v836_v39 = vpop.f32.mrf.mxu1 }
 0x4b7   : > { %v837_v41 = vadd.f32 %v1216_v38, %v836_v39 }
 0x4b9   : > { %v1440_v42 = vadd.f32 %v840_v40, %v837_v41  ;;  %v1220_v41 = vld [vmem:[%s1505_s12] ss:$0 sm:$0xff] }
 0x4bb   : > { %v844_v43 = vsel %vm823_vm5, %v1440_v42, 0.0 }
 0x4bc   : > { %845 = vadd.xlane.f32.xlu1 %v844_v43 }
 0x4be   : > { %v838_v44 = vpop.f32.mrf.mxu1 }
 0x52f   : > { %v846_v52 = vpop.xlane.xlu1 %845 }
 0x530   : > { %v854_v53 = vmul.f32 %v853_v51, %v846_v52 }
 0x532   : > { %v855_v54 = vsub.f32 %v1440_v42, %v854_v53 }
 0x534   : > { %v856_v55 = vmul.f32 %v855_v54, %v855_v54  ;;  %v871_v26 = vmul.f32 %v1217_v21, %v855_v54 }
 0x536   : > { %v857_v56 = vsel %vm823_vm5, %v856_v55, 0.0 }
 0x537   : > { %858 = vadd.xlane.f32.xlu2 %v857_v56 }
 0x5aa   : > { %v859_v2 = vpop.xlane.xlu2 %858 }
 0x5ab   : > { %v867_v3 = vmul.f32 %v866_v1, %v859_v2 }
 0x5ad   : > { %1241 = vrsqrt.f32 %v867_v3  ;;  %vm879_vm8 = vcmp.eq.f32.partialorder %v867_v3, inf  ;;  %v882_v13 = vand.u32 2147483648, %v867_v3  ;;  %vm881_vm9 = vcmp.eq.f32.partialorder %v867_v3, 0.0 }
 0x5b3   : > { %v1242_v4 = vpop.eup %1241 }
 0x5b4   : > { %v873_v5 = vmul.f32 %v1242_v4, %v867_v3 }
 0x5b6   : > { %v874_v6 = vmul.f32 %v1242_v4, %v873_v5 }
 0x5b8   : > { %v875_v7 = vmul.f32 0.5, %v874_v6 }
 0x5ba   : > { %v876_v8 = vsub.f32 1.5, %v875_v7 }
 0x5bc   : > { %v877_v10 = vmul.f32 %v1242_v4, %v876_v8 }
 0x5be   : > { %v878_v12 = vmul.f32 %v877_v10, %v867_v3 }
 0x5c0   : > { %v880_v14 = vsel %vm879_vm8, %v867_v3, %v878_v12 }
 0x5c1   : > { %v883_v15 = vsel %vm881_vm9, %v882_v13, %v880_v14 }
 0x5c2   : > { %v884_v16 = vadd.f32 1e-06, %v883_v15 }
 0x5c4   : > { %1243 = vrcp.f32 %v884_v16  ;;  %v896_v20 = vand.u32 2147483648, %v884_v16  ;;  %v894_v23 = vand.u32 2147483647, %v884_v16  ;;  %vm890_vm11 = vweird.f32 %v884_v16 }
 0x5c6   : > { %v897_v25 = vor.u32 1.1754944e-38, %v896_v20  ;;  %vm895_vm13 = vcmp.eq.f32.partialorder %v894_v23, 8.507059e+37 }
 0x5ca   : > { %v1244_v17 = vpop.eup %1243 }
 0x5cb   : > { %v886_v18 = vmul.f32 %v1244_v17, %v884_v16  ;;  %vm891_vm10 = vweird.f32 %v1244_v17 }
 0x5cc   : > { %vm892_vm12 = vmor %vm890_vm11, %vm891_vm10 }
 0x5cd   : > { %v887_v19 = vsub.f32 1.0, %v886_v18 }
 0x5cf   : > { %v888_v22 = vmul.f32 %v1244_v17, %v887_v19 }
 0x5d1   : > { %v889_v24 = vadd.f32 %v1244_v17, %v888_v22 }
 0x5d3   : > { %v893_v27 = vsel %vm892_vm12, %v1244_v17, %v889_v24 }
 0x5d4   : > { %v898_v29 = vsel %vm895_vm13, %v897_v25, %v893_v27 }
 0x5d5   : > { %v899_v30 = vmul.f32 %v898_v29, %v871_v26 }
 0x5d7   : > { %v903_v31 = vadd.f32 %v1218_v28, %v899_v30 }
 0x5d9   : > { %v904_v32 = vpack.c.bf16 %v903_v31, %v903_v31 }
 0x5db   : > { %1155 = vmatmul.msk.bf16.vlgmr.msra.gmra.mxu3 %vm823_vm5, %v904_v32 }
 0x65e   : > { %v937_v36 = vpop.f32.mrf.mxu3 }
 0x65f   : > { %v938_v37 = vadd.f32 %v1219_v35, %v937_v36 }
 0x661   : > { %v941_v38 = vmax.f32 %v938_v37, 0.0 }
 0x663   : > { %v942_v39 = vpack.c.bf16 %v941_v38, %v941_v38 }
 0x665   : > { %1172 = vmatmul.msk.bf16.vlgmr.msra.gmra.mxu0 %vm979_vm14, %v942_v39 }
 0x666   : > { %v939_v40 = vpop.f32.mrf.mxu3 }
 0x6e2   : > { %v992_v43 = vpop.f32.mrf.mxu0 }
 0x6e3   : > { %v993_v44 = vadd.f32 %v1220_v41, %v992_v43 }
 0x6e5   : > { %v996_v45 = vadd.f32 %v993_v44, %v1440_v42 }
 0x6e7   : > { %997 = vst.msk [vmem:[%s542_s14] sm:$0xff] %vm823_vm5, %v996_v45 }
 0x6ea   : > { %v994_v46 = vpop.f32.mrf.mxu0 }
 0x6eb PF: > { %s23_s27 = sadd.s32 1, %s1267_s27   ;;  %s1507_s25 = smov %s1263_s26 }
 0x6ec   : > { %p20_p5 = scmp.ge.s32.totalorder %s23_s27, 4   ;;  %s1508_s26 = smov %s1510_s28 }
 0x6ee   :  { %22 = sbr.rel (!%p20_p5) target bundleno = 2 (0x2), region = 114 }

</bundles_post_ra>
